<compile_context>
chip_gen: v7x
topology: tpu7x:2x2x1
jax: 0.10.0
libtpu: 0.0.40
codegen_flags: <defaults>
</compile_context>

<pallas_src>
import functools
import math

import jax
import jax.numpy as jnp
from jax.experimental import pallas as pl
from jax.experimental.pallas import tpu as pltpu


# ----------------------------- in-kernel helpers ------------------------------

def _layer_norm(x, gamma, beta, eps=1e-5):
    # centered two-pass variance (numerically robust, matches torch.nn.LayerNorm)
    mu = jnp.mean(x, axis=-1, keepdims=True)
    xc = x - mu
    var = jnp.mean(xc * xc, axis=-1, keepdims=True)
    return xc * jax.lax.rsqrt(var + eps) * gamma + beta


def _gelu_exact(x):
    # nn.GELU() default = exact erf formulation
    return 0.5 * x * (1.0 + jax.lax.erf(x * (1.0 / math.sqrt(2.0))))


# --------------------------------- kernels ------------------------------------

def attention_kernel(*refs, H, same_qk, compute_dtype, eps=1e-5):
    """One grid step = one batch element: LN0 -> fused QKV -> MHA -> out-proj -> +res."""
    if same_qk:
        (xq_ref, wqkv_ref, bqkv_ref, wo_ref, bo_ref, g0_ref, be0_ref, o_ref) = refs
    else:
        (xq_ref, xk_ref, wq_ref, bq_ref, wkv_ref, bkv_ref,
         wo_ref, bo_ref, g0_ref, be0_ref, o_ref) = refs

    Lq, E = xq_ref.shape
    Dh = E // H
    cd = compute_dtype

    xq = xq_ref[...].astype(jnp.float32)              # (Lq, E) f32 residual path
    g0 = g0_ref[...]
    b0 = be0_ref[...]
    q_in = _layer_norm(xq, g0, b0, eps).astype(cd)

    if same_qk:
        # fused Q|K|V projection: one (Lq, E) x (E, 3E) MXU matmul, f32 accumulation
        qkv = jnp.dot(q_in, wqkv_ref[...],
                      preferred_element_type=jnp.float32) + bqkv_ref[...]
        q2, k2, v2 = qkv[:, :E], qkv[:, E:2 * E], qkv[:, 2 * E:]
        Lk = Lq
    else:
        xk = xk_ref[...].astype(jnp.float32)
        Lk = xk.shape[0]
        k_in = _layer_norm(xk, g0, b0, eps).astype(cd)
        q2 = jnp.dot(q_in, wq_ref[...],
                     preferred_element_type=jnp.float32) + bq_ref[...]
        kv = jnp.dot(k_in, wkv_ref[...],
                     preferred_element_type=jnp.float32) + bkv_ref[...]
        k2, v2 = kv[:, :E], kv[:, E:]

    # split heads with a single reshape (no per-head slicing / stacking)
    q3 = q2.reshape(Lq, H, Dh).astype(cd)
    k3 = k2.reshape(Lk, H, Dh).astype(cd)
    v3 = v2.reshape(Lk, H, Dh).astype(cd)

    # TODO(synk): key_padding_mask (key_len) and flash-style Lk tiling for long
    # sequences are not implemented; scores are materialized as (H, Lq, Lk) f32.
    s = jnp.einsum('qhd,khd->hqk', q3, k3, preferred_element_type=jnp.float32)
    s = s - jnp.max(s, axis=-1, keepdims=True)
    p = jnp.exp(s)
    p = p * pl.reciprocal(jnp.sum(p, axis=-1, keepdims=True), approx=True)
    ah = jnp.einsum('hqk,khd->qhd', p.astype(cd), v3,
                    preferred_element_type=jnp.float32)          # (Lq, H, Dh)

    # merge heads once, then a single (Lq,E)x(E,E) output projection
    a2 = ah.reshape(Lq, E).astype(cd)
    attn = jnp.dot(a2, wo_ref[...], preferred_element_type=jnp.float32) + bo_ref[...]
    o_ref[...] = (xq + attn).astype(o_ref.dtype)                  # f32 intermediate


def ffn_kernel(x_ref, w1_ref, b1_ref, w2_ref, b2_ref, g1_ref, be1_ref, o_ref,
               *, compute_dtype, eps=1e-5):
    """One grid step = one row tile: LN1 -> fc1 -> GELU -> fc2 -> +residual."""
    cd = compute_dtype
    x = x_ref[...].astype(jnp.float32)                            # (TR, E) residual path
    y = _layer_norm(x, g1_ref[...], be1_ref[...], eps).astype(cd)
    h1 = _gelu_exact(jnp.dot(y, w1_ref[...],
                             preferred_element_type=jnp.float32) + b1_ref[...])
    h2 = jnp.dot(h1.astype(cd), w2_ref[...],
                 preferred_element_type=jnp.float32) + b2_ref[...]
    o_ref[...] = (x + h2).astype(o_ref.dtype)


# ------------------------------ wrapper helpers --------------------------------

def _vmem_cap_bytes():
    try:
        return int(pltpu.get_tpu_info().vmem_capacity_bytes)
    except Exception:
        return 64 << 20          # conservative: v7x per-TensorCore VMEM


def _vmem_limit(needed_bytes):
    cap = _vmem_cap_bytes()
    return int(min(max(needed_bytes + (4 << 20), 32 << 20), int(cap * 0.85)))


def _const_spec(a, single_buffer):
    """Full-array block with constant index -> VMEM-resident across the grid."""
    nd = a.ndim
    idx = lambda n, _nd=nd: (0,) * _nd
    if single_buffer:
        return pl.BlockSpec(a.shape, idx, pipeline_mode=pl.Buffered(1))
    return pl.BlockSpec(a.shape, idx)


def _pick_row_tile(total_rows, max_tile=512):
    if total_rows <= max_tile:
        return total_rows
    for t in range(max_tile, 7, -1):
        if total_rows % t == 0 and t % 8 == 0:
            return t
    return total_rows


def make_params(key, embed_dim):
    """PyTorch-convention parameters (xavier_uniform weights, zero biases, LN=1/0)."""
    E = embed_dim

    def xavier(k, shape):                          # torch (fan_out, fan_in)
        fan_out, fan_in = shape
        bound = math.sqrt(6.0 / (fan_in + fan_out))
        return jax.random.uniform(k, shape, jnp.float32, -bound, bound)

    k0, k1, k2, k3 = jax.random.split(key, 4)
    return dict(
        in_proj_weight=xavier(k0, (3 * E, E)),     # rows = [Q; K; V]
        in_proj_bias=jnp.zeros((3 * E,), jnp.float32),
        out_proj_weight=xavier(k1, (E, E)),
        out_proj_bias=jnp.zeros((E,), jnp.float32),
        fc1_weight=xavier(k2, (4 * E, E)),
        fc1_bias=jnp.zeros((4 * E,), jnp.float32),
        fc2_weight=xavier(k3, (E, 4 * E)),
        fc2_bias=jnp.zeros((E,), jnp.float32),
        ln0_weight=jnp.ones((E,), jnp.float32),
        ln0_bias=jnp.zeros((E,), jnp.float32),
        ln1_weight=jnp.ones((E,), jnp.float32),
        ln1_bias=jnp.zeros((E,), jnp.float32),
    )


# ---------------------------------- wrapper ------------------------------------

def transformer_encoder_layer_qkv(x_q, params, num_heads=4, x_k=None,
                                  compute_dtype=jnp.bfloat16):
    """x_q: (Lq, N, E) -> (Lq, N, E).  Lq (and Lk) must be multiples of 8 unless N==1."""
    Lq, N, E = x_q.shape
    H = num_heads
    assert E % H == 0
    Dh = E // H
    assert Lq % 8 == 0 or N == 1
    out_dtype = x_q.dtype
    out_isz = jnp.dtype(out_dtype).itemsize
    f32 = jnp.float32
    cd = compute_dtype

    # ---- pack weights (host-side XLA, one-time): (in,out) layout, fold 1/sqrt(Dh)
    # into Wq/bq, bf16 matmul weights, f32 layernorm params / biases ----
    scale = 1.0 / math.sqrt(Dh)
    in_w = params["in_proj_weight"].astype(f32)
    in_b = params["in_proj_bias"].astype(f32)
    wq = (in_w[:E] * scale).T.astype(cd)
    wk = in_w[E:2 * E].T.astype(cd)
    wv = in_w[2 * E:].T.astype(cd)
    bq = (in_b[:E] * scale)[None, :]
    bk = in_b[E:2 * E][None, :]
    bv = in_b[2 * E:][None, :]
    wo = params["out_proj_weight"].astype(f32).T.astype(cd)      # (E, E)
    bo = params["out_proj_bias"].astype(f32)[None, :]
    w1 = params["fc1_weight"].astype(f32).T.astype(cd)           # (E, 4E)
    b1 = params["fc1_bias"].astype(f32)[None, :]
    w2 = params["fc2_weight"].astype(f32).T.astype(cd)           # (4E, E)
    b2 = params["fc2_bias"].astype(f32)[None, :]
    g0 = params["ln0_weight"].astype(f32)[None, :]
    be0 = params["ln0_bias"].astype(f32)[None, :]
    g1 = params["ln1_weight"].astype(f32)[None, :]
    be1 = params["ln1_bias"].astype(f32)[None, :]

    same_qk = x_k is None
    # TODO(synk): avoid these transpose round trips by accepting batch-major inputs
    # upstream (matters on bandwidth-limited v5e).
    xq2 = jnp.transpose(x_q, (1, 0, 2)).reshape(N * Lq, E)

    if same_qk:
        Lk = Lq
        wqkv = jnp.concatenate([wq, wk, wv], axis=1)             # (E, 3E)
        bqkv = jnp.concatenate([bq, bk, bv], axis=1)             # (1, 3E)
        attn_args = (xq2, wqkv, bqkv, wo, bo, g0, be0)
        n_act = 1
    else:
        Lk = x_k.shape[0]
        assert Lk % 8 == 0 or N == 1
        xk2 = jnp.transpose(x_k, (1, 0, 2)).reshape(N * Lk, E)
        wkv = jnp.concatenate([wk, wv], axis=1)                  # (E, 2E)
        bkv = jnp.concatenate([bk, bv], axis=1)                  # (1, 2E)
        attn_args = (xq2, xk2, wq, bq, wkv, bkv, wo, bo, g0, be0)
        n_act = 2

    def row_spec(L):
        return pl.BlockSpec((L, E), lambda n: (n, 0))

    # ---------------- attention call (grid over batch) ----------------
    attn_weight_bytes = sum(int(a.size) * a.dtype.itemsize for a in attn_args[n_act:])
    act_in_bytes = (Lq + (0 if same_qk else Lk)) * E * x_q.dtype.itemsize
    attn_interm = (Lq * 3 * E * 6 + (0 if same_qk else Lk * 2 * E * 6)
                   + 3 * H * Lq * Lk * 4 + 6 * Lq * E * 4)

    if same_qk:
        proj_flops = 2 * N * Lq * E * 3 * E
    else:
        proj_flops = 2 * N * Lq * E * E + 2 * N * Lk * E * 2 * E
    attn_flops = proj_flops + 4 * N * Lq * Lk * E + 2 * N * Lq * E * E
    attn_trans = N * H * Lq * Lk + N * H * Lq + N * (Lq + (0 if same_qk else Lk))
    attn_bytes = int(N * act_in_bytes + attn_weight_bytes + N * Lq * E * 4)

    attn_k = functools.partial(attention_kernel, H=H, same_qk=same_qk,
                               compute_dtype=cd)

    def call_attention(single_buffer):
        in_specs = ([row_spec(Lq)] + ([] if same_qk else [row_spec(Lk)])
                    + [_const_spec(a, single_buffer) for a in attn_args[n_act:]])
        needed = (attn_weight_bytes * (1 if single_buffer else 2)
                  + 2 * act_in_bytes + 2 * Lq * E * 4 + attn_interm)
        return pl.pallas_call(
            attn_k,
            out_shape=jax.ShapeDtypeStruct((N * Lq, E), jnp.float32),
            grid=(N,),
            in_specs=in_specs,
            out_specs=row_spec(Lq),
            compiler_params=pltpu.CompilerParams(
                dimension_semantics=("parallel",),
                vmem_limit_bytes=_vmem_limit(needed)),
            cost_estimate=pl.CostEstimate(flops=int(attn_flops),
                                          transcendentals=int(attn_trans),
                                          bytes_accessed=int(attn_bytes)),
        )(*attn_args)

    try:
        x_mid = call_attention(True)
    except Exception:       # pl.Buffered(1) unsupported on this JAX -> default buffering
        x_mid = call_attention(False)

    # ---------------- FFN call (grid over row tiles) ----------------
    total_rows = N * Lq
    TR = _pick_row_tile(total_rows)
    ffn_args = (x_mid, w1, b1, w2, b2, g1, be1)
    ffn_weight_bytes = sum(int(a.size) * a.dtype.itemsize for a in ffn_args[1:])
    ffn_interm = TR * 4 * E * 6 + TR * E * 6 + TR * E * 4
    ffn_flops = 16 * total_rows * E * E
    ffn_trans = total_rows * 4 * E + total_rows
    ffn_bytes = int(total_rows * E * 4 + ffn_weight_bytes + total_rows * E * out_isz)

    ffn_k = functools.partial(ffn_kernel, compute_dtype=cd)

    def call_ffn(single_buffer):
        row = pl.BlockSpec((TR, E), lambda r: (r, 0))
        in_specs = [row] + [_const_spec(a, single_buffer) for a in ffn_args[1:]]
        needed = (ffn_weight_bytes * (1 if single_buffer else 2)
                  + 2 * TR * E * 4 + 2 * TR * E * out_isz + ffn_interm)
        return pl.pallas_call(
            ffn_k,
            out_shape=jax.ShapeDtypeStruct((total_rows, E), out_dtype),
            grid=(total_rows // TR,),
            in_specs=in_specs,
            out_specs=row,
            compiler_params=pltpu.CompilerParams(
                dimension_semantics=("parallel",),
                vmem_limit_bytes=_vmem_limit(needed)),
            cost_estimate=pl.CostEstimate(flops=int(ffn_flops),
                                          transcendentals=int(ffn_trans),
                                          bytes_accessed=int(ffn_bytes)),
        )(*ffn_args)

    try:
        out2 = call_ffn(True)
    except Exception:
        out2 = call_ffn(False)

    return jnp.transpose(out2.reshape(N, Lq, E), (1, 0, 2))


# -------------------------------- reference ------------------------------------

def _reference(x_q, params, num_heads, x_k=None, eps=1e-5):
    """Plain-JAX f32 reference of the PyTorch forward (eval mode)."""
    Lq, N, E = x_q.shape
    H = num_heads
    Dh = E // H

    def ln(x, g, b):
        mu = x.mean(-1, keepdims=True)
        var = ((x - mu) ** 2).mean(-1, keepdims=True)
        return (x - mu) / jnp.sqrt(var + eps) * g + b

    residual = x_q
    q_in = ln(x_q, params["ln0_weight"], params["ln0_bias"])
    k_in = q_in if x_k is None else ln(x_k, params["ln0_weight"], params["ln0_bias"])
    w, b = params["in_proj_weight"], params["in_proj_bias"]
    q = (q_in @ w[:E].T + b[:E]) / math.sqrt(Dh)
    k = k_in @ w[E:2 * E].T + b[E:2 * E]
    v = k_in @ w[2 * E:].T + b[2 * E:]

    def heads(t):
        return t.reshape(t.shape[0], N, H, Dh).transpose(1, 2, 0, 3)  # (N,H,L,Dh)

    qh, kh, vh = heads(q), heads(k), heads(v)
    s = jnp.einsum('nhqd,nhkd->nhqk', qh, kh)
    p = jax.nn.softmax(s, axis=-1)
    a = jnp.einsum('nhqk,nhkd->nhqd', p, vh)
    a = a.transpose(2, 0, 1, 3).reshape(Lq, N, E)
    a = a @ params["out_proj_weight"].T + params["out_proj_bias"]
    x = residual + a
    res2 = x
    y = ln(x, params["ln1_weight"], params["ln1_bias"])
    h1 = y @ params["fc1_weight"].T + params["fc1_bias"]
    h1 = 0.5 * h1 * (1.0 + jax.lax.erf(h1 / math.sqrt(2.0)))
    h2 = h1 @ params["fc2_weight"].T + params["fc2_bias"]
    return res2 + h2


if __name__ == "__main__":
    seq_len, batch, embed_dim, num_heads = 8, 2, 32, 4
    key = jax.random.PRNGKey(0)
    k_x, k_k, k_p = jax.random.split(key, 3)
    x_q = jax.random.normal(k_x, (seq_len, batch, embed_dim), jnp.float32)
    params = make_params(k_p, embed_dim)

    # self-attention path (x_k=None)
    out = transformer_encoder_layer_qkv(x_q, params, num_heads=num_heads)
    out = jax.block_until_ready(out)
    assert out.shape == (seq_len, batch, embed_dim)
    ref = _reference(x_q, params, num_heads)
    err = float(jnp.max(jnp.abs(out.astype(jnp.float32) - ref)))
    assert bool(jnp.all(jnp.isfinite(out))), "non-finite output (self)"
    assert err < 0.2, f"self-attn max abs err vs reference too large: {err}"

    # cross-attention path (x_k provided, seq_len'=16)
    x_k = jax.random.normal(k_k, (16, batch, embed_dim), jnp.float32)
    out_x = transformer_encoder_layer_qkv(x_q, params, num_heads=num_heads, x_k=x_k)
    out_x = jax.block_until_ready(out_x)
    assert out_x.shape == (seq_len, batch, embed_dim)
    ref_x = _reference(x_q, params, num_heads, x_k=x_k)
    err_x = float(jnp.max(jnp.abs(out_x.astype(jnp.float32) - ref_x)))
    assert bool(jnp.all(jnp.isfinite(out_x))), "non-finite output (cross)"
    assert err_x < 0.2, f"cross-attn max abs err vs reference too large: {err_x}"

    print("KERNEL_OK")
</pallas_src>

<mosaic_0001>
module attributes {stable_mosaic.version = 11 : i64} {
  func.func @attention_kernel(%arg0: i32, %arg1: memref<8x32xf32, #tpu.memory_space<vmem>>, %arg2: memref<32x96xbf16, #tpu.memory_space<vmem>>, %arg3: memref<1x96xf32, #tpu.memory_space<vmem>>, %arg4: memref<32x32xbf16, #tpu.memory_space<vmem>>, %arg5: memref<1x32xf32, #tpu.memory_space<vmem>>, %arg6: memref<1x32xf32, #tpu.memory_space<vmem>>, %arg7: memref<1x32xf32, #tpu.memory_space<vmem>>, %arg8: memref<8x32xf32, #tpu.memory_space<vmem>>) attributes {dimension_semantics = [#tpu.dimension_semantics<parallel>], iteration_bounds = array<i64: 2>, scalar_prefetch = 0 : i64, scratch_operands = 0 : i64, tpu.core_type = #tpu.core_type<tc>, window_params = [{transform_indices = @transform_0, window_bounds = array<i64: 8, 32>}, {pipeline_mode = #tpu.pipeline_mode<synchronous>, transform_indices = @transform_1, window_bounds = array<i64: 32, 96>}, {pipeline_mode = #tpu.pipeline_mode<synchronous>, transform_indices = @transform_2, window_bounds = array<i64: 1, 96>}, {pipeline_mode = #tpu.pipeline_mode<synchronous>, transform_indices = @transform_3, window_bounds = array<i64: 32, 32>}, {pipeline_mode = #tpu.pipeline_mode<synchronous>, transform_indices = @transform_4, window_bounds = array<i64: 1, 32>}, {pipeline_mode = #tpu.pipeline_mode<synchronous>, transform_indices = @transform_5, window_bounds = array<i64: 1, 32>}, {pipeline_mode = #tpu.pipeline_mode<synchronous>, transform_indices = @transform_6, window_bounds = array<i64: 1, 32>}, {transform_indices = @transform_7, window_bounds = array<i64: 8, 32>}]} {
    %c0 = arith.constant 0 : index
    %c0_0 = arith.constant 0 : index
    %0 = vector.load %arg1[%c0, %c0_0] : memref<8x32xf32, #tpu.memory_space<vmem>>, vector<8x32xf32>
    %c0_1 = arith.constant 0 : index
    %c0_2 = arith.constant 0 : index
    %1 = vector.load %arg6[%c0_1, %c0_2] : memref<1x32xf32, #tpu.memory_space<vmem>>, vector<1x32xf32>
    %c0_3 = arith.constant 0 : index
    %c0_4 = arith.constant 0 : index
    %2 = vector.load %arg7[%c0_3, %c0_4] : memref<1x32xf32, #tpu.memory_space<vmem>>, vector<1x32xf32>
    %cst = arith.constant dense<0.000000e+00> : vector<8xf32>
    %3 = vector.multi_reduction <add>, %0, %cst [1] : vector<8x32xf32> to vector<8xf32>
    %4 = vector.shape_cast %3 : vector<8xf32> to vector<8x1xf32>
    %cst_5 = arith.constant 3.200000e+01 : f32
    %5 = vector.broadcast %cst_5 : f32 to vector<8x1xf32>
    %6 = arith.divf %4, %5 : vector<8x1xf32>
    %7 = vector.broadcast %6 : vector<8x1xf32> to vector<8x32xf32>
    %8 = arith.subf %0, %7 : vector<8x32xf32>
    %9 = arith.mulf %8, %8 : vector<8x32xf32>
    %cst_6 = arith.constant dense<0.000000e+00> : vector<8xf32>
    %10 = vector.multi_reduction <add>, %9, %cst_6 [1] : vector<8x32xf32> to vector<8xf32>
    %11 = vector.shape_cast %10 : vector<8xf32> to vector<8x1xf32>
    %cst_7 = arith.constant 3.200000e+01 : f32
    %12 = vector.broadcast %cst_7 : f32 to vector<8x1xf32>
    %13 = arith.divf %11, %12 : vector<8x1xf32>
    %cst_8 = arith.constant 9.99999974E-6 : f32
    %14 = vector.broadcast %cst_8 : f32 to vector<8x1xf32>
    %15 = arith.addf %13, %14 : vector<8x1xf32>
    %16 = math.rsqrt %15 : vector<8x1xf32>
    %17 = vector.broadcast %16 : vector<8x1xf32> to vector<8x32xf32>
    %18 = arith.mulf %8, %17 : vector<8x32xf32>
    %19 = vector.broadcast %1 : vector<1x32xf32> to vector<8x32xf32>
    %20 = arith.mulf %18, %19 : vector<8x32xf32>
    %21 = vector.broadcast %2 : vector<1x32xf32> to vector<8x32xf32>
    %22 = arith.addf %20, %21 : vector<8x32xf32>
    %23 = arith.truncf %22 : vector<8x32xf32> to vector<8x32xbf16>
    %c0_9 = arith.constant 0 : index
    %c0_10 = arith.constant 0 : index
    %24 = vector.load %arg2[%c0_9, %c0_10] : memref<32x96xbf16, #tpu.memory_space<vmem>>, vector<32x96xbf16>
    %cst_11 = arith.constant dense<0.000000e+00> : vector<8x96xf32>
    %25 = tpu.matmul %23, %24, %cst_11 {dimension_numbers = #tpu.dot_dimension_numbers<[1], [0], [0], [1], [0, 0, 1, 1], [], []>} : vector<8x32xbf16>, vector<32x96xbf16>, vector<8x96xf32> -> vector<8x96xf32>
    %c0_12 = arith.constant 0 : index
    %c0_13 = arith.constant 0 : index
    %26 = vector.load %arg3[%c0_12, %c0_13] : memref<1x96xf32, #tpu.memory_space<vmem>>, vector<1x96xf32>
    %27 = vector.broadcast %26 : vector<1x96xf32> to vector<8x96xf32>
    %28 = arith.addf %25, %27 : vector<8x96xf32>
    %29 = vector.extract_strided_slice %28 {offsets = [0, 0], sizes = [8, 32], strides = [1, 1]} : vector<8x96xf32> to vector<8x32xf32>
    %30 = vector.extract_strided_slice %28 {offsets = [0, 32], sizes = [8, 32], strides = [1, 1]} : vector<8x96xf32> to vector<8x32xf32>
    %31 = vector.extract_strided_slice %28 {offsets = [0, 64], sizes = [8, 32], strides = [1, 1]} : vector<8x96xf32> to vector<8x32xf32>
    %32 = vector.shape_cast %29 : vector<8x32xf32> to vector<8x4x8xf32>
    %33 = arith.truncf %32 : vector<8x4x8xf32> to vector<8x4x8xbf16>
    %34 = vector.shape_cast %30 : vector<8x32xf32> to vector<8x4x8xf32>
    %35 = arith.truncf %34 : vector<8x4x8xf32> to vector<8x4x8xbf16>
    %36 = vector.shape_cast %31 : vector<8x32xf32> to vector<8x4x8xf32>
    %37 = arith.truncf %36 : vector<8x4x8xf32> to vector<8x4x8xbf16>
    "tpu.trace_start"() <{level = 10 : i32, message = "qhd,khd->hqk"}> : () -> ()
    %cst_14 = arith.constant dense<0.000000e+00> : vector<4x8x8xf32>
    %38 = tpu.matmul %33, %35, %cst_14 {dimension_numbers = #tpu.dot_dimension_numbers<[2], [2], [0], [0], [0, 1, 0, 0, 1, 0], [1], [1]>} : vector<8x4x8xbf16>, vector<8x4x8xbf16>, vector<4x8x8xf32> -> vector<4x8x8xf32>
    "tpu.trace_stop"() : () -> ()
    %cst_15 = arith.constant dense<0xFF800000> : vector<4x8xf32>
    %39 = vector.multi_reduction <maximumf>, %38, %cst_15 [2] : vector<4x8x8xf32> to vector<4x8xf32>
    %40 = vector.shape_cast %39 : vector<4x8xf32> to vector<4x8x1xf32>
    %41 = vector.broadcast %40 : vector<4x8x1xf32> to vector<4x8x8xf32>
    %42 = arith.subf %38, %41 : vector<4x8x8xf32>
    %43 = math.exp %42 : vector<4x8x8xf32>
    %cst_16 = arith.constant dense<0.000000e+00> : vector<4x8xf32>
    %44 = vector.multi_reduction <add>, %43, %cst_16 [2] : vector<4x8x8xf32> to vector<4x8xf32>
    %45 = vector.shape_cast %44 : vector<4x8xf32> to vector<4x8x1xf32>
    %46 = tpu.reciprocal %45 {approx = true} : vector<4x8x1xf32> -> vector<4x8x1xf32>
    %47 = vector.broadcast %46 : vector<4x8x1xf32> to vector<4x8x8xf32>
    %48 = arith.mulf %43, %47 : vector<4x8x8xf32>
    %49 = arith.truncf %48 : vector<4x8x8xf32> to vector<4x8x8xbf16>
    "tpu.trace_start"() <{level = 10 : i32, message = "hqk,khd->qhd"}> : () -> ()
    %cst_17 = arith.constant dense<0.000000e+00> : vector<4x8x8xf32>
    %50 = tpu.matmul %37, %49, %cst_17 {dimension_numbers = #tpu.dot_dimension_numbers<[0], [2], [2], [1], [0, 1, 0, 2, 1, 1], [1], [0]>} : vector<8x4x8xbf16>, vector<4x8x8xbf16>, vector<4x8x8xf32> -> vector<4x8x8xf32>
    %51 = tpu.transpose %50, [2, 0, 1] : vector<4x8x8xf32> -> vector<8x4x8xf32>
    "tpu.trace_stop"() : () -> ()
    %52 = vector.shape_cast %51 : vector<8x4x8xf32> to vector<8x32xf32>
    %53 = arith.truncf %52 : vector<8x32xf32> to vector<8x32xbf16>
    %c0_18 = arith.constant 0 : index
    %c0_19 = arith.constant 0 : index
    %54 = vector.load %arg4[%c0_18, %c0_19] : memref<32x32xbf16, #tpu.memory_space<vmem>>, vector<32x32xbf16>
    %cst_20 = arith.constant dense<0.000000e+00> : vector<8x32xf32>
    %55 = tpu.matmul %53, %54, %cst_20 {dimension_numbers = #tpu.dot_dimension_numbers<[1], [0], [0], [1], [0, 0, 1, 1], [], []>} : vector<8x32xbf16>, vector<32x32xbf16>, vector<8x32xf32> -> vector<8x32xf32>
    %c0_21 = arith.constant 0 : index
    %c0_22 = arith.constant 0 : index
    %56 = vector.load %arg5[%c0_21, %c0_22] : memref<1x32xf32, #tpu.memory_space<vmem>>, vector<1x32xf32>
    %57 = vector.broadcast %56 : vector<1x32xf32> to vector<8x32xf32>
    %58 = arith.addf %55, %57 : vector<8x32xf32>
    %59 = arith.addf %0, %58 : vector<8x32xf32>
    %c0_23 = arith.constant 0 : index
    %c0_24 = arith.constant 0 : index
    %60 = vector.load %arg8[%c0_23, %c0_24] : memref<8x32xf32, #tpu.memory_space<vmem>>, vector<8x32xf32>
    tpu.vector_store %arg8[%c0_23, %c0_24], %59 {strides = array<i32>} : memref<8x32xf32, #tpu.memory_space<vmem>>, vector<8x32xf32>,
    return
  }
  func.func @transform_0(%arg0: i32) -> (i32, i32) {
    %c0_i32 = arith.constant 0 : i32
    %c0_i32_0 = arith.constant 0 : i32
    return %arg0, %c0_i32 : i32, i32
  }
  func.func @transform_1(%arg0: i32) -> (i32, i32) {
    %c0_i32 = arith.constant 0 : i32
    %c0_i32_0 = arith.constant 0 : i32
    %c0_i32_1 = arith.constant 0 : i32
    return %c0_i32, %c0_i32_0 : i32, i32
  }
  func.func @transform_2(%arg0: i32) -> (i32, i32) {
    %c0_i32 = arith.constant 0 : i32
    %c0_i32_0 = arith.constant 0 : i32
    %c0_i32_1 = arith.constant 0 : i32
    return %c0_i32, %c0_i32_0 : i32, i32
  }
  func.func @transform_3(%arg0: i32) -> (i32, i32) {
    %c0_i32 = arith.constant 0 : i32
    %c0_i32_0 = arith.constant 0 : i32
    %c0_i32_1 = arith.constant 0 : i32
    return %c0_i32, %c0_i32_0 : i32, i32
  }
  func.func @transform_4(%arg0: i32) -> (i32, i32) {
    %c0_i32 = arith.constant 0 : i32
    %c0_i32_0 = arith.constant 0 : i32
    %c0_i32_1 = arith.constant 0 : i32
    return %c0_i32, %c0_i32_0 : i32, i32
  }
  func.func @transform_5(%arg0: i32) -> (i32, i32) {
    %c0_i32 = arith.constant 0 : i32
    %c0_i32_0 = arith.constant 0 : i32
    %c0_i32_1 = arith.constant 0 : i32
    return %c0_i32, %c0_i32_0 : i32, i32
  }
  func.func @transform_6(%arg0: i32) -> (i32, i32) {
    %c0_i32 = arith.constant 0 : i32
    %c0_i32_0 = arith.constant 0 : i32
    %c0_i32_1 = arith.constant 0 : i32
    return %c0_i32, %c0_i32_0 : i32, i32
  }
  func.func @transform_7(%arg0: i32) -> (i32, i32) {
    %c0_i32 = arith.constant 0 : i32
    %c0_i32_0 = arith.constant 0 : i32
    return %arg0, %c0_i32 : i32, i32
  }
}

module attributes {stable_mosaic.version = 11 : i64} {
  func.func @attention_kernel(%arg0: i32, %arg1: memref<8x32xf32, #tpu.memory_space<vmem>>, %arg2: memref<32x96xbf16, #tpu.memory_space<vmem>>, %arg3: memref<1x96xf32, #tpu.memory_space<vmem>>, %arg4: memref<32x32xbf16, #tpu.memory_space<vmem>>, %arg5: memref<1x32xf32, #tpu.memory_space<vmem>>, %arg6: memref<1x32xf32, #tpu.memory_space<vmem>>, %arg7: memref<1x32xf32, #tpu.memory_space<vmem>>, %arg8: memref<8x32xf32, #tpu.memory_space<vmem>>) attributes {dimension_semantics = [#tpu.dimension_semantics<parallel>], iteration_bounds = array<i64: 2>, scalar_prefetch = 0 : i64, scratch_operands = 0 : i64, tpu.core_type = #tpu.core_type<tc>, window_params = [{transform_indices = @transform_0, window_bounds = array<i64: 8, 32>}, {pipeline_mode = #tpu.pipeline_mode<synchronous>, transform_indices = @transform_1, window_bounds = array<i64: 32, 96>}, {pipeline_mode = #tpu.pipeline_mode<synchronous>, transform_indices = @transform_2, window_bounds = array<i64: 1, 96>}, {pipeline_mode = #tpu.pipeline_mode<synchronous>, transform_indices = @transform_3, window_bounds = array<i64: 32, 32>}, {pipeline_mode = #tpu.pipeline_mode<synchronous>, transform_indices = @transform_4, window_bounds = array<i64: 1, 32>}, {pipeline_mode = #tpu.pipeline_mode<synchronous>, transform_indices = @transform_5, window_bounds = array<i64: 1, 32>}, {pipeline_mode = #tpu.pipeline_mode<synchronous>, transform_indices = @transform_6, window_bounds = array<i64: 1, 32>}, {transform_indices = @transform_7, window_bounds = array<i64: 8, 32>}]} {
    %c0 = arith.constant 0 : index
    %c0_0 = arith.constant 0 : index
    %0 = vector.load %arg1[%c0, %c0_0] : memref<8x32xf32, #tpu.memory_space<vmem>>, vector<8x32xf32>
    %c0_1 = arith.constant 0 : index
    %c0_2 = arith.constant 0 : index
    %1 = vector.load %arg6[%c0_1, %c0_2] : memref<1x32xf32, #tpu.memory_space<vmem>>, vector<1x32xf32>
    %c0_3 = arith.constant 0 : index
    %c0_4 = arith.constant 0 : index
    %2 = vector.load %arg7[%c0_3, %c0_4] : memref<1x32xf32, #tpu.memory_space<vmem>>, vector<1x32xf32>
    %cst = arith.constant dense<0.000000e+00> : vector<8xf32>
    %3 = vector.multi_reduction <add>, %0, %cst [1] : vector<8x32xf32> to vector<8xf32>
    %4 = vector.shape_cast %3 : vector<8xf32> to vector<8x1xf32>
    %cst_5 = arith.constant 3.200000e+01 : f32
    %5 = vector.broadcast %cst_5 : f32 to vector<8x1xf32>
    %6 = arith.divf %4, %5 : vector<8x1xf32>
    %7 = vector.broadcast %6 : vector<8x1xf32> to vector<8x32xf32>
    %8 = arith.subf %0, %7 : vector<8x32xf32>
    %9 = arith.mulf %8, %8 : vector<8x32xf32>
    %cst_6 = arith.constant dense<0.000000e+00> : vector<8xf32>
    %10 = vector.multi_reduction <add>, %9, %cst_6 [1] : vector<8x32xf32> to vector<8xf32>
    %11 = vector.shape_cast %10 : vector<8xf32> to vector<8x1xf32>
    %cst_7 = arith.constant 3.200000e+01 : f32
    %12 = vector.broadcast %cst_7 : f32 to vector<8x1xf32>
    %13 = arith.divf %11, %12 : vector<8x1xf32>
    %cst_8 = arith.constant 9.99999974E-6 : f32
    %14 = vector.broadcast %cst_8 : f32 to vector<8x1xf32>
    %15 = arith.addf %13, %14 : vector<8x1xf32>
    %16 = math.rsqrt %15 : vector<8x1xf32>
    %17 = vector.broadcast %16 : vector<8x1xf32> to vector<8x32xf32>
    %18 = arith.mulf %8, %17 : vector<8x32xf32>
    %19 = vector.broadcast %1 : vector<1x32xf32> to vector<8x32xf32>
    %20 = arith.mulf %18, %19 : vector<8x32xf32>
    %21 = vector.broadcast %2 : vector<1x32xf32> to vector<8x32xf32>
    %22 = arith.addf %20, %21 : vector<8x32xf32>
    %23 = arith.truncf %22 : vector<8x32xf32> to vector<8x32xbf16>
    %c0_9 = arith.constant 0 : index
    %c0_10 = arith.constant 0 : index
    %24 = vector.load %arg2[%c0_9, %c0_10] : memref<32x96xbf16, #tpu.memory_space<vmem>>, vector<32x96xbf16>
    %cst_11 = arith.constant dense<0.000000e+00> : vector<8x96xf32>
    %25 = tpu.matmul %23, %24, %cst_11 {dimension_numbers = #tpu.dot_dimension_numbers<[1], [0], [0], [1], [0, 0, 1, 1], [], []>} : vector<8x32xbf16>, vector<32x96xbf16>, vector<8x96xf32> -> vector<8x96xf32>
    %c0_12 = arith.constant 0 : index
    %c0_13 = arith.constant 0 : index
    %26 = vector.load %arg3[%c0_12, %c0_13] : memref<1x96xf32, #tpu.memory_space<vmem>>, vector<1x96xf32>
    %27 = vector.broadcast %26 : vector<1x96xf32> to vector<8x96xf32>
    %28 = arith.addf %25, %27 : vector<8x96xf32>
    %29 = vector.extract_strided_slice %28 {offsets = [0, 0], sizes = [8, 32], strides = [1, 1]} : vector<8x96xf32> to vector<8x32xf32>
    %30 = vector.extract_strided_slice %28 {offsets = [0, 32], sizes = [8, 32], strides = [1, 1]} : vector<8x96xf32> to vector<8x32xf32>
    %31 = vector.extract_strided_slice %28 {offsets = [0, 64], sizes = [8, 32], strides = [1, 1]} : vector<8x96xf32> to vector<8x32xf32>
    %32 = vector.shape_cast %29 : vector<8x32xf32> to vector<8x4x8xf32>
    %33 = arith.truncf %32 : vector<8x4x8xf32> to vector<8x4x8xbf16>
    %34 = vector.shape_cast %30 : vector<8x32xf32> to vector<8x4x8xf32>
    %35 = arith.truncf %34 : vector<8x4x8xf32> to vector<8x4x8xbf16>
    %36 = vector.shape_cast %31 : vector<8x32xf32> to vector<8x4x8xf32>
    %37 = arith.truncf %36 : vector<8x4x8xf32> to vector<8x4x8xbf16>
    "tpu.trace_start"() <{level = 10 : i32, message = "qhd,khd->hqk"}> : () -> ()
    %cst_14 = arith.constant dense<0.000000e+00> : vector<4x8x8xf32>
    %38 = tpu.matmul %33, %35, %cst_14 {dimension_numbers = #tpu.dot_dimension_numbers<[2], [2], [0], [0], [0, 1, 0, 0, 1, 0], [1], [1]>} : vector<8x4x8xbf16>, vector<8x4x8xbf16>, vector<4x8x8xf32> -> vector<4x8x8xf32>
    "tpu.trace_stop"() : () -> ()
    %cst_15 = arith.constant dense<0xFF800000> : vector<4x8xf32>
    %39 = vector.multi_reduction <maximumf>, %38, %cst_15 [2] : vector<4x8x8xf32> to vector<4x8xf32>
    %40 = vector.shape_cast %39 : vector<4x8xf32> to vector<4x8x1xf32>
    %41 = vector.broadcast %40 : vector<4x8x1xf32> to vector<4x8x8xf32>
    %42 = arith.subf %38, %41 : vector<4x8x8xf32>
    %43 = math.exp %42 : vector<4x8x8xf32>
    %cst_16 = arith.constant dense<0.000000e+00> : vector<4x8xf32>
    %44 = vector.multi_reduction <add>, %43, %cst_16 [2] : vector<4x8x8xf32> to vector<4x8xf32>
    %45 = vector.shape_cast %44 : vector<4x8xf32> to vector<4x8x1xf32>
    %46 = tpu.reciprocal %45 {approx = true} : vector<4x8x1xf32> -> vector<4x8x1xf32>
    %47 = vector.broadcast %46 : vector<4x8x1xf32> to vector<4x8x8xf32>
    %48 = arith.mulf %43, %47 : vector<4x8x8xf32>
    %49 = arith.truncf %48 : vector<4x8x8xf32> to vector<4x8x8xbf16>
    "tpu.trace_start"() <{level = 10 : i32, message = "hqk,khd->qhd"}> : () -> ()
    %cst_17 = arith.constant dense<0.000000e+00> : vector<4x8x8xf32>
    %50 = tpu.matmul %37, %49, %cst_17 {dimension_numbers = #tpu.dot_dimension_numbers<[0], [2], [2], [1], [0, 1, 0, 2, 1, 1], [1], [0]>} : vector<8x4x8xbf16>, vector<4x8x8xbf16>, vector<4x8x8xf32> -> vector<4x8x8xf32>
    %51 = tpu.transpose %50, [2, 0, 1] : vector<4x8x8xf32> -> vector<8x4x8xf32>
    "tpu.trace_stop"() : () -> ()
    %52 = vector.shape_cast %51 : vector<8x4x8xf32> to vector<8x32xf32>
    %53 = arith.truncf %52 : vector<8x32xf32> to vector<8x32xbf16>
    %c0_18 = arith.constant 0 : index
    %c0_19 = arith.constant 0 : index
    %54 = vector.load %arg4[%c0_18, %c0_19] : memref<32x32xbf16, #tpu.memory_space<vmem>>, vector<32x32xbf16>
    %cst_20 = arith.constant dense<0.000000e+00> : vector<8x32xf32>
    %55 = tpu.matmul %53, %54, %cst_20 {dimension_numbers = #tpu.dot_dimension_numbers<[1], [0], [0], [1], [0, 0, 1, 1], [], []>} : vector<8x32xbf16>, vector<32x32xbf16>, vector<8x32xf32> -> vector<8x32xf32>
    %c0_21 = arith.constant 0 : index
    %c0_22 = arith.constant 0 : index
    %56 = vector.load %arg5[%c0_21, %c0_22] : memref<1x32xf32, #tpu.memory_space<vmem>>, vector<1x32xf32>
    %57 = vector.broadcast %56 : vector<1x32xf32> to vector<8x32xf32>
    %58 = arith.addf %55, %57 : vector<8x32xf32>
    %59 = arith.addf %0, %58 : vector<8x32xf32>
    %c0_23 = arith.constant 0 : index
    %c0_24 = arith.constant 0 : index
    %60 = vector.load %arg8[%c0_23, %c0_24] : memref<8x32xf32, #tpu.memory_space<vmem>>, vector<8x32xf32>
    tpu.vector_store %arg8[%c0_23, %c0_24], %59 {strides = array<i32>} : memref<8x32xf32, #tpu.memory_space<vmem>>, vector<8x32xf32>,
    return
  }
  func.func @transform_0(%arg0: i32) -> (i32, i32) {
    %c0_i32 = arith.constant 0 : i32
    %c0_i32_0 = arith.constant 0 : i32
    return %arg0, %c0_i32 : i32, i32
  }
  func.func @transform_1(%arg0: i32) -> (i32, i32) {
    %c0_i32 = arith.constant 0 : i32
    %c0_i32_0 = arith.constant 0 : i32
    %c0_i32_1 = arith.constant 0 : i32
    return %c0_i32, %c0_i32_0 : i32, i32
  }
  func.func @transform_2(%arg0: i32) -> (i32, i32) {
    %c0_i32 = arith.constant 0 : i32
    %c0_i32_0 = arith.constant 0 : i32
    %c0_i32_1 = arith.constant 0 : i32
    return %c0_i32, %c0_i32_0 : i32, i32
  }
  func.func @transform_3(%arg0: i32) -> (i32, i32) {
    %c0_i32 = arith.constant 0 : i32
    %c0_i32_0 = arith.constant 0 : i32
    %c0_i32_1 = arith.constant 0 : i32
    return %c0_i32, %c0_i32_0 : i32, i32
  }
  func.func @transform_4(%arg0: i32) -> (i32, i32) {
    %c0_i32 = arith.constant 0 : i32
    %c0_i32_0 = arith.constant 0 : i32
    %c0_i32_1 = arith.constant 0 : i32
    return %c0_i32, %c0_i32_0 : i32, i32
  }
  func.func @transform_5(%arg0: i32) -> (i32, i32) {
    %c0_i32 = arith.constant 0 : i32
    %c0_i32_0 = arith.constant 0 : i32
    %c0_i32_1 = arith.constant 0 : i32
    return %c0_i32, %c0_i32_0 : i32, i32
  }
  func.func @transform_6(%arg0: i32) -> (i32, i32) {
    %c0_i32 = arith.constant 0 : i32
    %c0_i32_0 = arith.constant 0 : i32
    %c0_i32_1 = arith.constant 0 : i32
    return %c0_i32, %c0_i32_0 : i32, i32
  }
  func.func @transform_7(%arg0: i32) -> (i32, i32) {
    %c0_i32 = arith.constant 0 : i32
    %c0_i32_0 = arith.constant 0 : i32
    return %arg0, %c0_i32 : i32, i32
  }
}

</mosaic_0001>

<bundles_post_ra>
// kernel: tpu_custom_call.1
= control target key start
LH: loop header
LB: loop body
LE: loop exit
PB: predicated region body
PF: predicated region fallthrough
CT: control target
= control target key end

     0   :  { %12 = vsyncpa [#allocation3], 0  ;;  %s3370_s0 = inlined_call_operand.hbm [shape: f32[16,32], index: 0, kind: input, shape index: {}]   ;;  %s3371_s1 = inlined_call_operand.hbm [shape: bf16[32,96], index: 1, kind: input, shape index: {}]   ;;  %s3372_s2 = inlined_call_operand.vmem [shape: f32[1,96], index: 2, kind: input, shape index: {}]   ;;  %s3373_s3 = inlined_call_operand.hbm [shape: bf16[32,32], index: 3, kind: input, shape index: {}]   ;;  %s3374_s4 = inlined_call_operand.vmem [shape: f32[1,32], index: 4, kind: input, shape index: {}]   ;;  %s3375_s5 = inlined_call_operand.vmem [shape: f32[1,32], index: 5, kind: input, shape index: {}]   ;;  %s3376_s6 = inlined_call_operand.vmem [shape: f32[1,32], index: 6, kind: input, shape index: {}]   ;;  %s3377_s7 = inlined_call_operand.hbm [shape: f32[16,32], index: 7, kind: output, shape index: {}]  }
   0x1   :  { %14 = vsyncpa [#allocation3 + $0x1], 0 }
   0x2   :  { %15 = vsyncpa [#allocation6], 0 }
   0x3   :  { %16 = vsyncpa [#allocation4], 0 }
   0x4   :  { %18 = vsyncpa [#allocation4 + $0x1], 0  ;;  %s2902_s24 = smov 0   ;;  %s2904_s25 = smov 0  }
   0x5   :  { %s2906_s26 = smov 0   ;;  %s2908_s27 = smov 0  }
   0x6 LB: > { %s2923_s28 = sadd.s32 4294967295, %s2841_s27   ;;  %s2454_s29 = sadd.s32 4294967294, %s2841_s27   ;;  %s2841_s27 = sphi %s2908_s27, %s3397_s27   ;;  %s2837_s26 = sphi %s2906_s26, %s3396_s26   ;;  %s2833_s25 = sphi %s2904_s25, %s3395_s25   ;;  %s2829_s24 = sphi %s2902_s24, %s3394_s24  }
   0x7   : > { %p44_p0 = scmp.ne.s32.totalorder %s2833_s25, %s2829_s24  ;;  %p3378_p1 = scmp.eq.s32.totalorder %s2923_s28, 0 }
   0x8   : > { %p200_p3 = scmp.eq.s32.totalorder %s2454_s29, 1  ;;  %p2455_p5 = scmp.ge.s32.totalorder %s2841_s27, 1 }
   0x9   : > { %p2932_p4 = por %p3378_p1, %p44_p0  ;;  %p207_p7 = scmp.lt.s32.totalorder %s2841_s27, 3 }
   0xa   : > { %p2937_p6 = por %p200_p3, %p44_p0  ;;  %s2843_s10 = smov [#allocation5]  }
   0xb   : > { %s3381_s30 = scalar_select %p2932_p4, 1, 0 }
   0xc   : > { %s3382_s8 = scalar_select %p2937_p6, 1, 0 }
   0xd   : > { %p2942_p8 = pnand %p2455_p5, %p207_p7  ;;  %s219_s11 = sshll.u32 %s2843_s10, 4  ;;  %s2946_s11 = int_to_ptr.vmem [resolvable:$true] %s219_s11 }
   0xe   : > { %s2844_s13 = smov [#allocation7]   ;;  %s2685_s17 = scalar_lea.hbm %s3371_s1, 256 }
   0xf   : > { %p2592_p9 = pneg %p2942_p8  ;;  %s235_s14 = sshll.u32 %s2844_s13, 4  ;;  %s2957_s14 = int_to_ptr.vmem [resolvable:$true] %s235_s14 }
  0x10   : > { %p2686_p12 = scmp.ne.s32.totalorder %s3371_s1, %s2685_s17  ;;  %p2692_p5 = scmp.lt.u32.totalorder %s2685_s17, %s3371_s1 }
  0x11   : > { %p2953_p11 = pnand %p2592_p9, %p3378_p1 }
  0x13   : > { %p2687_p13 = pneg %p2953_p11 }
  0x15   : > { %p2688_p0 = pnand %p2687_p13, %p2686_p12 }
  0x17   : > { %p2689_p3 = pneg %p2688_p0 }
  0x19   : > { %p2694_p7 = pnand %p2692_p5, %p2689_p3 }
  0x1b   : > { %2697 = shalt.err (!%p2694_p7)
}
  0x1c   : > { %s2698_s22 = scalar_lea.vmem %s2946_s11, 256  ;;  %p2706_p2 = scmp.lt.s32.totalorder %s2946_s11, %s2946_s11 }
  0x1d   : > { %p2699_p9 = scmp.ne.s32.totalorder %s2946_s11, %s2698_s22  ;;  %p2707_p12 = scmp.lt.s32.totalorder %s2698_s22, %s2698_s22 }
  0x1f   : > { %p2701_p10 = pnand %p2699_p9, %p2687_p13  ;;  %p2708_p0 = por %p2707_p12, %p2706_p2 }
  0x21   : > { %p2702_p1 = pneg %p2701_p10 }
  0x23   : > { %p2709_p6 = pnand %p2708_p0, %p2702_p1 }
  0x25   : > { %2712 = shalt.err (!%p2709_p6)
}
  0x26   : > { %s2845_s23 = smov 64   ;;  %s2846_s29 = smov 4  }
  0x27   : > { %2595 = dma.hbm_to_vmem [thread:$0]  (!%p2953_p11), %s3371_s1, 256, %s2946_s11, [#allocation6], %s2845_s23, %s2845_s23, %s2846_s29  }
  0x28   : > { %s2713_s17 = scalar_lea.hbm %s3373_s3, 256 }
  0x29   : > { %p2714_p2 = scmp.ne.s32.totalorder %s3373_s3, %s2713_s17  ;;  %p2720_p10 = scmp.lt.u32.totalorder %s2713_s17, %s3373_s3 }
  0x2b   : > { %p2716_p1 = pnand %p2714_p2, %p2687_p13 }
  0x2d   : > { %p2717_p6 = pneg %p2716_p1 }
  0x2f   : > { %p2722_p3 = pnand %p2720_p10, %p2717_p6 }
  0x31   : > { %2725 = shalt.err (!%p2722_p3)
}
  0x32   : > { %s2726_s11 = scalar_lea.vmem %s2957_s14, 256  ;;  %p2734_p12 = scmp.lt.s32.totalorder %s2957_s14, %s2957_s14 }
  0x33   : > { %p2727_p5 = scmp.ne.s32.totalorder %s2957_s14, %s2726_s11  ;;  %p2735_p0 = scmp.lt.s32.totalorder %s2726_s11, %s2726_s11 }
  0x35   : > { %p2729_p7 = pnand %p2727_p5, %p2687_p13  ;;  %p2736_p2 = por %p2735_p0, %p2734_p12 }
  0x37   : > { %p2730_p9 = pneg %p2729_p7 }
  0x39   : > { %p2737_p1 = pnand %p2736_p2, %p2730_p9 }
  0x3b   : > { %2740 = shalt.err (!%p2737_p1)
}
  0x3c   : > { %2598 = dma.hbm_to_vmem [thread:$0]  (!%p2953_p11), %s3373_s3, 256, %s2957_s14, [#allocation6], %s2845_s23, %s2845_s23, %s2846_s29  }
  0x3d   : > { %s3012_s13 = sadd.s32 1, %s2841_s27   ;;  %s31_s12 = sadd.s32 1, %s2837_s26 }
  0x3e   : > { %s28_s15 = ssub.s32 %s2841_s27, %s3012_s13  ;;  %p38_p13 = scmp.ne.s32.totalorder %s2837_s26, %s2833_s25 }
  0x3f   : > { %p29_p6 = scmp.eq.s32.totalorder %s28_s15, 0  ;;  %p39_p10 = scmp.eq.s32.totalorder %s2841_s27, 0 }
  0x40   : > { %p3385_p3 = scmp.eq.s32.totalorder %s2923_s28, 1  ;;  %p2609_p7 = scmp.lt.s32.totalorder %s2841_s27, 2 }
  0x41   : > { %s3028_s17 = scalar_select %p29_p6, %s2837_s26, %s31_s12  }
  0x42   : > { %p3022_p5 = por %p3385_p3, %p38_p13  ;;  %p40_p9 = por %p39_p10, %p38_p13 }
  0x43   : > { %s258_s18 = sand.u32 1, %s2837_s26   ;;  %s2460_s14 = sshll.u32 %s2841_s27, 7 }
  0x44   : > { %s3386_s16 = scalar_select %p3022_p5, 1, 0 }
  0x45   : > { %s2459_s19 = sshll.u32 %s258_s18, 3  ;;  %s3035_s20 = scalar_lea.hbm %s3370_s0, %s2460_s14 }
  0x46   : > { %s262_s21 = scalar_lea.vmem [#allocation2], %s2459_s19  ;;  %p3039_p11 = pnand %p2609_p7, %p40_p9 }
  0x47   : > { %s269_s11 = sshll.u32 %s262_s21, 4  ;;  %s259_s10 = scalar_lea.sflag [#allocation3], %s258_s18  ;;  %s3037_s11 = int_to_ptr.vmem [resolvable:$true] %s269_s11 }
  0x48   : > { %s2741_s12 = scalar_lea.hbm %s3035_s20, 128  ;;  %p2743_p0 = pneg %p3039_p11 }
  0x49   : > { %p2742_p12 = scmp.ne.s32.totalorder %s3035_s20, %s2741_s12  ;;  %s2746_s14 = scalar_lea.hbm %s3370_s0, 256 }
  0x4a   : > { %p2747_p13 = scmp.lt.u32.totalorder %s3035_s20, %s3370_s0  ;;  %p2748_p6 = scmp.lt.u32.totalorder %s2746_s14, %s2741_s12 }
  0x4b   : > { %p2744_p2 = pnand %p2743_p0, %p2742_p12  ;;  %p2750_p3 = scmp.lt.u32.totalorder %s2741_s12, %s3035_s20 }
  0x4c   : > { %p2749_p10 = por %p2748_p6, %p2747_p13 }
  0x4d   : > { %p2745_p1 = pneg %p2744_p2 }
  0x4e   : > { %p2751_p7 = por %p2750_p3, %p2749_p10 }
  0x50   : > { %p2752_p9 = pnand %p2751_p7, %p2745_p1 }
  0x52   : > { %2755 = shalt.err (!%p2752_p9)
}
  0x53   : > { %s2756_s18 = scalar_lea.vmem %s3037_s11, 128  ;;  %s2847_s21 = smov [#allocation2]  }
  0x54   : > { %p2757_p12 = scmp.ne.s32.totalorder %s3037_s11, %s2756_s18  ;;  %s2761_s15 = sshll.u32 %s2847_s21, 4  ;;  %s2762_s15 = int_to_ptr.vmem [resolvable:$false] %s2761_s15 }
  0x55   : > { %s2763_s19 = scalar_lea.vmem %s2762_s15, 256  ;;  %p2764_p4 = scmp.lt.s32.totalorder %s3037_s11, %s2762_s15 }
  0x56   : > { %p2759_p2 = pnand %p2757_p12, %p2743_p0  ;;  %p2765_p13 = scmp.lt.s32.totalorder %s2763_s19, %s2756_s18 }
  0x58   : > { %p2760_p5 = pneg %p2759_p2  ;;  %p2766_p6 = por %p2765_p13, %p2764_p4 }
  0x5a   : > { %p2767_p10 = pnand %p2766_p6, %p2760_p5 }
  0x5c   : > { %2770 = shalt.err (!%p2767_p10)
}
  0x5d   : > { %2602 = dma.hbm_to_vmem [thread:$0]  (!%p3039_p11), %s3035_s20, 128, %s3037_s11, %s259_s10  }
  0x5e   : > { %278 = sbr.rel (%p2942_p8) target bundleno = 2656 (0xa60), region = 48  ;;  %s3071_s12 = sand.u32 (!%p2942_p8), 1, %s2833_s25  }
  0x5f   : > { %s2462_s14 = sshll.u32 (!%p2942_p8), %s3071_s12, 3  ;;  %s281_s23 = scalar_lea.sflag (!%p2942_p8), [#allocation3], %s3071_s12 }
  0x60   : > { %s3077_s29 = scalar_lea.vmem (!%p2942_p8), [#allocation2], %s2462_s14  ;;  %p3388_p4 = scmp.ne.s32.totalorder (!%p2942_p8), %s3381_s30, 0 }
  0x65   : > { %2816 = dma.done.wait (%p3388_p4), %s281_s23, 128  }
  0x66   : > { %2818 = vsyncadd (%p3388_p4), %s281_s23, 4294967168  ;;  %p3389_p5 = scmp.eq.s32.totalorder %s2923_s28, 0 }
  0x68   : > { %2820 = dma.done.wait (%p3389_p5), [#allocation6], 512   ;;  %p3390_p8 = pmov %p3389_p5 }
  0x69   : > { %vm327_vm0 = vcmask 261120   ;;  %v324_v0 = vld [vmem:[%s3077_s29] sm:$0xff]  ;;  %v2662_v7 = vld [vmem:[#allocation5] sm:$0xff]   ;;  %v2848_v8 = vmov 0.0   ;;  %vm2849_vm1 = vmmov 0   ;;  %v2663_v9 = vld [vmem:[#allocation5 + $0x8] sm:$0xff]   ;;  %v438_v32 = vlaneseq }
  0x6a   : > { %2822 = vsyncadd (%p3390_p8), [#allocation6], 4294966784  ;;  %v328_v1 = vsel %vm327_vm0, %v324_v0, 0.0  ;;  %2516 = vmatprep.subr.bf16.mxu0 %v2848_v8  ;;  %2520 = vmatprep.mubr.msk.bf16.mxu0 %vm2849_vm1, %v2848_v8  ;;  %v2466_v14 = vld [vmem:[%s3375_s5] ss:$0 sm:$0xff]  ;;  %s2850_s18 = smov 104  }
  0x6b   : > { %329 = vadd.xlane.f32.xlu0 %v328_v1  ;;  %2517 = vmatpush3.bf16.msra.mxu0 %v2662_v7  ;;  %v2467_v16 = vld [vmem:[%s3376_s6] ss:$0 sm:$0xff]  ;;  %s2851_s21 = smov 120   ;;  %s2852_s15 = smov 112   ;;  %v2854_v30 = vmov 1983009808  }
  0x6c   : > { %2524 = vmatprep.subr.bf16.mxu1 %v2848_v8  ;;  %2518 = vmatprep.subr.bf16.mxu0 %v2848_v8  ;;  %v2468_v20 = vld [vmem:[%s3372_s2] ss:$0 sm:$0xff]  ;;  %s2853_s19 = smov 96   ;;  %v436_v31 = vunpack.c.l.s4 %v2854_v30  ;;  %v439_v35 = vshrl.u32 %v438_v32, 7  ;;  %v2855_v37 = vmov 1934713408  }
  0x6d   : > { %2526 = vmatprep.mubr.msk.bf16.mxu1 %vm2849_vm1, %v2848_v8  ;;  %v468_v38 = vunpack.c.l.s4 %v2855_v37  ;;  %s2857_s23 = smov 64   ;;  %vm1169_vm2 = vcmask 1043456   ;;  %vm1165_vm3 = vcmask 64512   ;;  %s2858_s30 = smov 16   ;;  %vm2278_vm4 = vcmask 130048  }
  0x6e   : > { %v437_v34 = vunpack.c.0.s8 %v436_v31  ;;  %s2859_s9 = smov 8   ;;  %s2860_s20 = smov 24   ;;  %vm2280_vm5 = vcmask 195584  }
  0x6f   : > { %2519 = vmatpush3.bf16.msra.mxu0 %v2663_v9  ;;  %v469_v42 = vunpack.c.0.s8 %v468_v38  ;;  %s2491_s10 = sshll.u32 %s2923_s28, 7  ;;  %s2352_s28 = scalar_lea.sflag [#allocation4], %s3071_s12 }
  0x70   : > { %2536 = vmatprep.subr.bf16.mxu0 %v2848_v8  ;;  %v3125_v40 = vsub.s32 %v437_v34, %v439_v35  ;;  %p3391_p0 = scmp.ne.s32.totalorder %s3386_s16, 0 }
  0x71   : > { %v3130_v49 = vsub.s32 %v469_v42, %v439_v35  ;;  %v2856_v42 = vmov 0  }
  0xf8   : > { %v330_v2 = vpop.xlane.xlu0 %329 }
  0xf9   : > { %v332_v3 = vmul.f32 0.03125, %v330_v2 }
  0xfb   : > { %v333_v4 = vsub.f32 %v324_v0, %v332_v3 }
  0xfd   : > { %v334_v5 = vmul.f32 %v333_v4, %v333_v4 }
  0xff   : > { %v335_v6 = vsel %vm327_vm0, %v334_v5, 0.0 }
 0x100   : > { %336 = vadd.xlane.f32.xlu0 %v335_v6 }
 0x18d   : > { %v337_v10 = vpop.xlane.xlu0 %336 }
 0x18e   : > { %v338_v11 = vmul.f32 0.03125, %v337_v10 }
 0x190   : > { %v339_v12 = vadd.f32 1e-05, %v338_v11 }
 0x192   : > { %2666 = vrsqrt.f32 %v339_v12 }
 0x19c   : > { %v2667_v13 = vpop.eup %2666 }
 0x19d   : > { %v341_v15 = vmul.f32 %v2667_v13, %v333_v4 }
 0x19f   : > { %v348_v17 = vmul.f32 %v2466_v14, %v341_v15 }
 0x1a1   : > { %v355_v18 = vadd.f32 %v2467_v16, %v348_v17 }
 0x1a3   : > { %v356_v19 = vpack.c.bf16 %v355_v18, %v355_v18 }
 0x1a5   : > { %2521 = vmatmul.mubr.msk.bf16.vlgmr.msra.gmra.mrb[0].mxu0 %vm327_vm0, %v356_v19 }
 0x1a6   : > { %2538 = vmatprep.mubr.msk.bf16.mxu0 %vm2849_vm1, %v2848_v8 }
 0x278   : > { %v417_v21 = vpop.f32.mrb[0].mxu0 }
 0x279   : > { %v3110_v22 = vadd.f32 %v2468_v20, %v417_v21  ;;  %v2522_v23 = vpop.f32.mrb[1].mxu0 }
 0x27a   : > { %v420_v24 = vpop.f32.mrb[2].mxu0 }
 0x27b   : > { %430 = vrot.lane.b32.xlu0 %v3110_v22, %s2850_s18  ;;  %424 = vrot.lane.b32.xlu1 %v3110_v22, %s2851_s21  ;;  %v2523_v25 = vpop.f32.mrb[3].mxu0  ;;  %s322_s18 = scalar_lea.vmem [#allocation8], %s2462_s14 }
 0x27c   : > { %s2365_s21 = sshll.u32 %s322_s18, 4  ;;  %s3327_s21 = int_to_ptr.vmem [resolvable:$true] %s2365_s21 }
 0x27d   : > { %s2771_s14 = scalar_lea.vmem %s3327_s21, 128 }
 0x27e   : > { %p2772_p11 = scmp.ne.s32.totalorder %s3327_s21, %s2771_s14 }
 0x27f   : > { %427 = vrot.lane.b32.xlu1 %v3110_v22, %s2852_s15 }
 0x280   : > { %p2773_p1 = pnand %p2772_p11, %p3391_p0 }
 0x282   : > { %p2774_p3 = pneg %p2773_p1 }
 0x283   : > { %509 = vrot.lane.b32.xlu1 %v3110_v22, %s2853_s19 }
 0x2ed   : > { %v3116_v26 = vpop.permute.xlu1 %424  ;;  %v3122_v28 = vpop.permute.xlu0 %430 }
 0x2ee   : > { %511 = vrot.lane.b32.xlu1 %v3116_v26, %s2853_s19 }
 0x2f1   : > { %v3119_v27 = vpop.permute.xlu1 %427 }
 0x2f2   : > { %513 = vrot.lane.b32.xlu1 %v3119_v27, %s2853_s19 }
 0x2f5   : > { %v510_v29 = vpop.permute.xlu1 %509 }
 0x2f6   : > { %515 = vrot.lane.b32.xlu1 %v3122_v28, %s2853_s19 }
 0x360   : > { %v512_v33 = vpop.permute.xlu1 %511 }
 0x364   : > { %v514_v36 = vpop.permute.xlu1 %513 }
 0x365   : > { %v521_v39 = vcombine.low %v510_v29, %v514_v36  ;;  %v522_v43 = vcombine.high %v510_v29, %v514_v36 }
 0x367   : > { %v529_v46 = vrot.slane %v521_v39, %v3125_v40  ;;  %v536_v50 = vrot.slane %v522_v43, %v3125_v40 }
 0x368   : > { %v516_v41 = vpop.permute.xlu1 %515 }
 0x369   : > { %v537_v44 = vcombine.low %v512_v33, %v516_v41  ;;  %v538_v45 = vcombine.high %v512_v33, %v516_v41 }
 0x36b   : > { %v545_v47 = vrot.slane %v537_v44, %v3125_v40  ;;  %v552_v48 = vrot.slane %v538_v45, %v3125_v40 }
 0x36d   : > { %v553_v51 = vcombine.low %v529_v46, %v545_v47  ;;  %v554_v52 = vcombine.high %v529_v46, %v545_v47  ;;  %v569_v55 = vcombine.low %v536_v50, %v552_v48  ;;  %v570_v61 = vcombine.high %v536_v50, %v552_v48 }
 0x36f   : > { %v561_v53 = vrot.slane %v553_v51, %v3130_v49  ;;  %v568_v54 = vrot.slane %v554_v52, %v3130_v49  ;;  %v577_v60 = vrot.slane %v569_v55, %v3130_v49  ;;  %v584_v1 = vrot.slane %v570_v61, %v3130_v49 }
 0x370   : > { %v449_v61 = vcombine.low %v3116_v26, %v3122_v28 }
 0x371   : > { %v589_v56 = vpack.c.bf16 %v561_v53, %v561_v53  ;;  %v585_v57 = vcombine.high %v561_v53, %v2848_v8  ;;  %v586_v59 = vcombine.high %v568_v54, %v2848_v8  ;;  %v591_v62 = vpack.c.bf16 %v568_v54, %v568_v54 }
 0x372   : > { %v587_v0 = vcombine.high %v577_v60, %v2848_v8  ;;  %v593_v2 = vpack.c.bf16 %v577_v60, %v577_v60  ;;  %v588_v4 = vcombine.high %v584_v1, %v2848_v8  ;;  %v595_v5 = vpack.c.bf16 %v584_v1, %v584_v1 }
 0x373   : > { %747 = vxpose.xlu1.c.b16.start.end [1/1] (short) (narrow) %v589_v56, 16  ;;  %v590_v58 = vpack.c.bf16 %v585_v57, %v585_v57  ;;  %v592_v63 = vpack.c.bf16 %v586_v59, %v586_v59  ;;  %v433_v59 = vcombine.low %v3110_v22, %v3119_v27  ;;  %v434_v60 = vcombine.high %v3110_v22, %v3119_v27 }
 0x374   : > { %v594_v3 = vpack.c.bf16 %v587_v0, %v587_v0  ;;  %v596_v6 = vpack.c.bf16 %v588_v4, %v588_v4  ;;  %v457_v1 = vrot.slane %v449_v61, %v3125_v40 }
 0x375   : > { %763 = vxpose.xlu0.c.b16.start.end [1/1] (short) (narrow) %v590_v58, 16  ;;  %v448_v0 = vrot.slane %v434_v60, %v3125_v40 }
 0x377   : > { %779 = vxpose.xlu1.c.b16.start.end [1/1] (short) (narrow) %v591_v62, 16  ;;  %v450_v62 = vcombine.high %v3116_v26, %v3122_v28 }
 0x379   : > { %795 = vxpose.xlu0.c.b16.start.end [1/1] (short) (narrow) %v592_v63, 16  ;;  %v441_v63 = vrot.slane %v433_v59, %v3125_v40 }
 0x37b   : > { %811 = vxpose.xlu1.c.b16.start.end [1/1] (short) (narrow) %v593_v2, 16  ;;  %v464_v2 = vrot.slane %v450_v62, %v3125_v40  ;;  %v466_v4 = vcombine.high %v441_v63, %v457_v1 }
 0x37d   : > { %827 = vxpose.xlu0.c.b16.start.end [1/1] (short) (narrow) %v594_v3, 16  ;;  %v465_v3 = vcombine.low %v441_v63, %v457_v1 }
 0x37f   : > { %843 = vxpose.xlu1.c.b16.start.end [1/1] (short) (narrow) %v595_v5, 16  ;;  %v481_v5 = vcombine.low %v448_v0, %v464_v2 }
 0x381   : > { %859 = vxpose.xlu0.c.b16.start.end [1/1] (short) (narrow) %v596_v6, 16  ;;  %v482_v6 = vcombine.high %v448_v0, %v464_v2 }
 0x3d9   : > { %v755_v7 = vpop.trf.xlu1 }
 0x3db   : > { %v771_v9 = vpop.trf.xlu0 }
 0x3dd   : > { %v787_v10 = vpop.trf.xlu1 }
 0x3df   : > { %v803_v11 = vpop.trf.xlu0 }
 0x3e1   : > { %v819_v12 = vpop.trf.xlu1 }
 0x3e2   : > { %v875_v14 = vcombine.low %v755_v7, %v819_v12 }
 0x3e3   : > { %v835_v13 = vpop.trf.xlu0 }
 0x3e4   : > { %v909_v16 = vcombine.low %v771_v9, %v835_v13  ;;  %v882_v19 = vrot.slane %v875_v14, %v3125_v40  ;;  %v489_v9 = vrot.slane %v481_v5, %v3130_v49 }
 0x3e5   : > { %v851_v15 = vpop.trf.xlu1 }
 0x3e6   : > { %v883_v17 = vcombine.low %v787_v10, %v851_v15  ;;  %v916_v23 = vrot.slane %v909_v16, %v3125_v40  ;;  %v499_v14 = vcombine.high %v489_v9, %v2848_v8 }
 0x3e7   : > { %v867_v18 = vpop.trf.xlu0 }
 0x3e8   : > { %v890_v20 = vrot.slane %v883_v17, %v3125_v40  ;;  %v917_v21 = vcombine.low %v803_v11, %v867_v18 }
 0x3ea   : > { %v891_v24 = vcombine.low %v882_v19, %v890_v20  ;;  %v924_v25 = vrot.slane %v917_v21, %v3125_v40  ;;  %v892_v29 = vcombine.high %v882_v19, %v890_v20 }
 0x3ec   : > { %v925_v30 = vcombine.low %v916_v23, %v924_v25  ;;  %v926_v31 = vcombine.high %v916_v23, %v924_v25  ;;  %v899_v32 = vrot.slane %v891_v24, %v3130_v49  ;;  %v906_v38 = vrot.slane %v892_v29, %v3130_v49 }
 0x3ee   : > { %v933_v33 = vrot.slane %v925_v30, %v3130_v49  ;;  %v940_v34 = vrot.slane %v926_v31, %v3130_v49  ;;  %v947_v36 = vshrl.u32 %v899_v32, 16  ;;  %v963_v45 = vshrl.u32 %v906_v38, 16 }
 0x3ef   : > { %v907_v46 = vcombine.high %v899_v32, %v2856_v42  ;;  %v908_v53 = vcombine.high %v906_v38, %v2856_v42 }
 0x3f0   : > { %v945_v35 = vpack.i.b16 %v933_v33, %v899_v32  ;;  %v948_v37 = vshrl.u32 %v933_v33, 16  ;;  %v964_v41 = vshrl.u32 %v940_v34, 16  ;;  %v941_v43 = vcombine.high %v933_v33, %v2856_v42 }
 0x3f1   : > { %v961_v44 = vpack.i.b16 %v940_v34, %v906_v38  ;;  %v942_v50 = vcombine.high %v940_v34, %v2856_v42  ;;  %v955_v52 = vshrl.u32 %v907_v46, 16  ;;  %v971_v57 = vshrl.u32 %v908_v53, 16 }
 0x3f2   : > { %975 = vxpose.xlu1.c.b16.start.end [1/1] (short) (narrow) %v945_v35, 16  ;;  %v949_v39 = vpack.i.b16 %v948_v37, %v947_v36  ;;  %v965_v47 = vpack.i.b16 %v964_v41, %v963_v45  ;;  %v956_v48 = vshrl.u32 %v941_v43, 16  ;;  %v953_v51 = vpack.i.b16 %v941_v43, %v907_v46 }
 0x3f3   : > { %v972_v55 = vshrl.u32 %v942_v50, 16  ;;  %v969_v56 = vpack.i.b16 %v942_v50, %v908_v53 }
 0x3f4   : > { %991 = vxpose.xlu0.c.b16.start.end [1/1] (short) (narrow) %v949_v39, 16  ;;  %v957_v54 = vpack.i.b16 %v956_v48, %v955_v52 }
 0x3f5   : > { %v973_v58 = vpack.i.b16 %v972_v55, %v971_v57 }
 0x3f6   : > { %1039 = vxpose.xlu1.c.b16.start.end [1/1] (short) (narrow) %v961_v44, 16 }
 0x3f8   : > { %1055 = vxpose.xlu0.c.b16.start.end [1/1] (short) (narrow) %v965_v47, 16 }
 0x3fa   : > { %1007 = vxpose.xlu1.c.b16.start.end [1/1] (short) (narrow) %v953_v51, 16 }
 0x3fc   : > { %1023 = vxpose.xlu0.c.b16.start.end [1/1] (short) (narrow) %v957_v54, 16 }
 0x3fe   : > { %1071 = vxpose.xlu1.c.b16.start.end [1/1] (short) (narrow) %v969_v56, 16 }
 0x400   : > { %1087 = vxpose.xlu0.c.b16.start.end [1/1] (short) (narrow) %v973_v58, 16 }
 0x402   : > { %597 = vrot.lane.b32.xlu1 %v3110_v22, %s2857_s23  ;;  %v473_v22 = vrot.slane %v465_v3, %v3130_v49 }
 0x404   : > { %v497_v12 = vcombine.high %v473_v22, %v2848_v8  ;;  %v2472_v20 = vpack.c.bf16 %v489_v9, %v473_v22 }
 0x406   : > { %601 = vrot.lane.b32.xlu1 %v3119_v27, %s2857_s23  ;;  %v480_v27 = vrot.slane %v466_v4, %v3130_v49  ;;  %v2474_v18 = vpack.c.bf16 %v499_v14, %v497_v12  ;;  %v692_v33 = vrot.slane %v2472_v20, %v3125_v40 }
 0x408   : > { %v498_v13 = vcombine.high %v480_v27, %v2848_v8  ;;  %v717_v31 = vrot.slane %v2474_v18, %v3125_v40 }
 0x409   : > { %599 = vrot.lane.b32.xlu0 %v3116_v26, %s2857_s23  ;;  %v496_v26 = vrot.slane %v482_v6, %v3130_v49 }
 0x40b   : > { %v500_v15 = vcombine.high %v496_v26, %v2848_v8  ;;  %v2473_v21 = vpack.c.bf16 %v496_v26, %v480_v27 }
 0x40d   : > { %v2475_v19 = vpack.c.bf16 %v500_v15, %v498_v13  ;;  %v700_v34 = vrot.slane %v2473_v21, %v3125_v40 }
 0x40f   : > { %v725_v32 = vrot.slane %v2475_v19, %v3125_v40  ;;  %v701_v45 = vcombine.low %v692_v33, %v700_v34 }
 0x411   : > { %v726_v44 = vcombine.low %v717_v31, %v725_v32  ;;  %v708_v52 = vrot.slane %v701_v45, %v3130_v49 }
 0x413   : > { %v733_v50 = vrot.slane %v726_v44, %v3130_v49  ;;  %v709_v63 = vcombine.high %v708_v52, %v2856_v42  ;;  %v738_v5 = vshrl.u32 %v708_v52, 16 }
 0x415   : > { %v734_v60 = vcombine.high %v733_v50, %v2856_v42  ;;  %v737_v62 = vpack.i.b16 %v733_v50, %v708_v52  ;;  %v739_v3 = vshrl.u32 %v733_v50, 16  ;;  %v744_v9 = vshrl.u32 %v709_v63, 16 }
 0x417   : > { %v743_v1 = vpack.i.b16 %v734_v60, %v709_v63  ;;  %v745_v27 = vshrl.u32 %v734_v60, 16 }
 0x419   : > { %v746_v26 = vpack.i.b16 %v745_v27, %v744_v9 }
 0x458   : > { %v983_v7 = vpop.trf.xlu1 }
 0x45a   : > { %v999_v10 = vpop.trf.xlu0 }
 0x45c   : > { %v1047_v11 = vpop.trf.xlu1 }
 0x45d   : > { %v1103_v24 = vcombine.low %v983_v7, %v1047_v11  ;;  %v740_v7 = vpack.i.b16 %v739_v3, %v738_v5 }
 0x45e   : > { %v1063_v16 = vpop.trf.xlu0 }
 0x45f   : > { %v1128_v29 = vcombine.low %v999_v10, %v1063_v16  ;;  %v1110_v36 = vrot.slane %v1103_v24, %v3125_v40 }
 0x460   : > { %v1015_v17 = vpop.trf.xlu1 }
 0x461   : > { %v1135_v39 = vrot.slane %v1128_v29, %v3125_v40 }
 0x462   : > { %v1031_v23 = vpop.trf.xlu0 }
 0x464   : > { %v1079_v25 = vpop.trf.xlu1 }
 0x465   : > { %v1111_v30 = vcombine.low %v1015_v17, %v1079_v25 }
 0x466   : > { %v1095_v35 = vpop.trf.xlu0 }
 0x467   : > { %v1118_v37 = vrot.slane %v1111_v30, %v3125_v40  ;;  %v1136_v38 = vcombine.low %v1031_v23, %v1095_v35 }
 0x469   : > { %v1119_v41 = vcombine.low %v1110_v36, %v1118_v37  ;;  %v1143_v43 = vrot.slane %v1136_v38, %v3125_v40 }
 0x46b   : > { %v1126_v46 = vrot.slane %v1119_v41, %v3130_v49  ;;  %v1144_v47 = vcombine.low %v1135_v39, %v1143_v43 }
 0x46d   : > { %v1151_v48 = vrot.slane %v1144_v47, %v3130_v49  ;;  %v1127_v51 = vcombine.high %v1126_v46, %v2856_v42  ;;  %v1156_v55 = vshrl.u32 %v1126_v46, 16 }
 0x46f   : > { %v1155_v53 = vpack.i.b16 %v1151_v48, %v1126_v46  ;;  %v1152_v54 = vcombine.high %v1151_v48, %v2856_v42  ;;  %v1157_v56 = vshrl.u32 %v1151_v48, 16  ;;  %v1162_v4 = vshrl.u32 %v1127_v51, 16 }
 0x471   : > { %v1171_v57 = vsel %vm1169_vm2, %v1155_v53, 0  ;;  %v1161_v58 = vpack.i.b16 %v1152_v54, %v1127_v51  ;;  %v1158_v59 = vpack.i.b16 %v1157_v56, %v1156_v55  ;;  %v1163_v2 = vshrl.u32 %v1152_v54, 16 }
 0x472   : > { %2525 = vmatpush3.bf16.msra.mxu1 %v1171_v57 }
 0x473   : > { %v1263_v61 = vsel %vm1169_vm2, %v1161_v58, 0  ;;  %2530 = vmatprep.subr.bf16.mxu1 %v2848_v8  ;;  %v1217_v0 = vsel %vm1169_vm2, %v1158_v59, 0  ;;  %v1164_v6 = vpack.i.b16 %v1163_v2, %v1162_v4 }
 0x474   : > { %2537 = vmatpush3.bf16.msra.mxu0 %v1263_v61  ;;  %v598_v32 = vpop.permute.xlu1 %597 }
 0x475   : > { %2527 = vmatmul.mubr.msk.bf16.vlgmr.msra.gmra.mrb[0].mxu1 %vm1165_vm3, %v737_v62  ;;  %2548 = vmatprep.subr.bf16.mxu0 %v2848_v8  ;;  %v1309_v22 = vsel %vm1169_vm2, %v1164_v6, 0 }
 0x476   : > { %2531 = vmatpush3.bf16.msra.mxu1 %v1217_v0  ;;  %2532 = vmatprep.mubr.msk.bf16.mxu1 %vm2849_vm1, %v2848_v8 }
 0x477   : > { %2539 = vmatmul.mubr.msk.bf16.vlgmr.msra.gmra.mrb[4].mxu0 %vm1165_vm3, %v743_v1  ;;  %2542 = vmatprep.subr.bf16.mxu1 %v2848_v8 }
 0x478   : > { %2550 = vmatprep.mubr.msk.bf16.mxu0 %vm2849_vm1, %v2848_v8  ;;  %v602_v33 = vpop.permute.xlu1 %601 }
 0x479   : > { %v609_v36 = vcombine.low %v598_v32, %v602_v33  ;;  %v610_v39 = vcombine.high %v598_v32, %v602_v33 }
 0x47b   : > { %v600_v37 = vpop.permute.xlu0 %599  ;;  %v624_v46 = vrot.slane %v610_v39, %v3125_v40 }
 0x47d   : > { %2533 = vmatmul.mubr.msk.bf16.vlgmr.msra.gmra.mrb[4].mxu1 %vm1165_vm3, %v740_v7 }
 0x47e   : > { %2543 = vmatpush3.bf16.msra.mxu1 %v1309_v22  ;;  %2544 = vmatprep.mubr.msk.bf16.mxu1 %vm2849_vm1, %v2848_v8 }
 0x47f   : > { %2554 = vmatprep.subr.bf16.mxu1 %v2848_v8 }
 0x485   : > { %2545 = vmatmul.mubr.msk.bf16.vlgmr.msra.gmra.mrb[8].mxu1 %vm1165_vm3, %v746_v26 }
 0x486   : > { %2556 = vmatprep.mubr.msk.bf16.mxu1 %vm2849_vm1, %v2848_v8 }
 0x548   : > { %v3215_v10 = vpop.f32.mrb[0].mxu1 }
 0x549   : > { %v2528_v11 = vpop.f32.mrb[1].mxu1  ;;  %v1351_v12 = vsel %vm1165_vm3, %v3215_v10, -inf }
 0x54a   : > { %1352 = vmax.xlane.f32.xlu1 %v1351_v12  ;;  %v1210_v13 = vpop.f32.mrb[2].mxu1  ;;  %v3219_v14 = vpop.f32.mrb[4].mxu0 }
 0x54b   : > { %v2529_v15 = vpop.f32.mrb[3].mxu1  ;;  %v2540_v16 = vpop.f32.mrb[5].mxu0  ;;  %v1357_v31 = vsel %vm1165_vm3, %v3219_v14, -inf }
 0x54c   : > { %v1302_v17 = vpop.f32.mrb[6].mxu0 }
 0x54d   : > { %v2541_v18 = vpop.f32.mrb[7].mxu0 }
 0x550   : > { %v3221_v19 = vpop.f32.mrb[4].mxu1 }
 0x551   : > { %v2534_v20 = vpop.f32.mrb[5].mxu1  ;;  %v1354_v59 = vsel %vm1165_vm3, %v3221_v19, -inf }
 0x552   : > { %v1256_v21 = vpop.f32.mrb[6].mxu1 }
 0x553   : > { %v2535_v23 = vpop.f32.mrb[7].mxu1 }
 0x558   : > { %v3223_v24 = vpop.f32.mrb[8].mxu1 }
 0x559   : > { %v2546_v25 = vpop.f32.mrb[9].mxu1  ;;  %v1360_v63 = vsel %vm1165_vm3, %v3223_v24, -inf }
 0x55a   : > { %v1348_v29 = vpop.f32.mrb[10].mxu1 }
 0x55b   : > { %603 = vrot.lane.b32.xlu1 %v3122_v28, %s2857_s23  ;;  %v2547_v30 = vpop.f32.mrb[11].mxu1  ;;  %v617_v28 = vrot.slane %v609_v36, %v3125_v40  ;;  %s3325_s23 = scalar_lea.hbm %s3377_s7, %s2491_s10 }
 0x57f   : > { %1358 = vmax.xlane.f32.xlu1 %v1357_v31 }
 0x5d7   : > { %v3229_v34 = vpop.xlane.xlu1 %1352 }
 0x5d8   : > { %v1363_v35 = vsub.f32 %v3215_v10, %v3229_v34 }
 0x5db   : > { %v604_v38 = vpop.permute.xlu1 %603 }
 0x5dc   : > { %v625_v41 = vcombine.low %v600_v37, %v604_v38  ;;  %v626_v43 = vcombine.high %v600_v37, %v604_v38 }
 0x5de   : > { %v633_v44 = vrot.slane %v625_v41, %v3125_v40  ;;  %v640_v45 = vrot.slane %v626_v43, %v3125_v40 }
 0x5e0   : > { %v641_v47 = vcombine.low %v617_v28, %v633_v44  ;;  %v657_v50 = vcombine.low %v624_v46, %v640_v45  ;;  %v658_v55 = vcombine.high %v624_v46, %v640_v45  ;;  %v642_v60 = vcombine.high %v617_v28, %v633_v44 }
 0x5e2   : > { %v649_v48 = vrot.slane %v641_v47, %v3130_v49  ;;  %v665_v54 = vrot.slane %v657_v50, %v3130_v49  ;;  %v672_v57 = vrot.slane %v658_v55, %v3130_v49  ;;  %v656_v61 = vrot.slane %v642_v60, %v3130_v49 }
 0x5e4   : > { %v677_v51 = vpack.c.bf16 %v649_v48, %v649_v48  ;;  %v673_v52 = vcombine.high %v649_v48, %v2848_v8  ;;  %v681_v56 = vpack.c.bf16 %v665_v54, %v665_v54  ;;  %v683_v58 = vpack.c.bf16 %v672_v57, %v672_v57 }
 0x5e5   : > { %v679_v62 = vpack.c.bf16 %v656_v61, %v656_v61  ;;  %v674_v0 = vcombine.high %v656_v61, %v2848_v8  ;;  %v675_v2 = vcombine.high %v665_v54, %v2848_v8  ;;  %v676_v4 = vcombine.high %v672_v57, %v2848_v8 }
 0x5e6   : > { %1399 = vxpose.xlu0.c.b16.start.end [1/1] (short) (narrow) %v677_v51, 16  ;;  %v678_v53 = vpack.c.bf16 %v673_v52, %v673_v52 }
 0x5e7   : > { %v680_v1 = vpack.c.bf16 %v674_v0, %v674_v0  ;;  %v682_v3 = vpack.c.bf16 %v675_v2, %v675_v2  ;;  %v684_v5 = vpack.c.bf16 %v676_v4, %v676_v4 }
 0x5e8   : > { %1415 = vxpose.xlu1.c.b16.start.end [1/1] (short) (narrow) %v678_v53, 16  ;;  %v1367_v53 = vmul.f32 1.442695, %v1363_v35 }
 0x5ea   : > { %2668 = vpow2.f32 %v1367_v53 }
 0x5ec   : > { %1463 = vxpose.xlu1.c.b16.start.end [1/1] (short) (narrow) %v681_v56, 16 }
 0x5f0   : > { %1495 = vxpose.xlu1.c.b16.start.end [1/1] (short) (narrow) %v683_v58, 16 }
 0x5f3   : > { %1355 = vmax.xlane.f32.xlu0 %v1354_v59 }
 0x5f4   : > { %v2669_v10 = vpop.eup %2668 }
 0x5f5   : > { %v1375_v34 = vsel %vm1165_vm3, %v2669_v10, 0.0 }
 0x60c   : > { %v1359_v6 = vpop.xlane.xlu1 %1358 }
 0x60d   : > { %v1365_v54 = vsub.f32 %v3219_v14, %v1359_v6 }
 0x60f   : > { %v1371_v60 = vmul.f32 1.442695, %v1365_v54 }
 0x620   : > { %1431 = vxpose.xlu0.c.b16.start.end [1/1] (short) (narrow) %v679_v62, 16 }
 0x62d   : > { %1361 = vmax.xlane.f32.xlu0 %v1360_v63 }
 0x64c   : > { %v1407_v7 = vpop.trf.xlu0 }
 0x64e   : > { %v1423_v22 = vpop.trf.xlu1 }
 0x652   : > { %v1471_v9 = vpop.trf.xlu1 }
 0x653   : > { %v1527_v13 = vcombine.low %v1407_v7, %v1471_v9 }
 0x655   : > { %v1534_v17 = vrot.slane %v1527_v13, %v3125_v40 }
 0x656   : > { %v1503_v12 = vpop.trf.xlu1 }
 0x65a   : > { %1447 = vxpose.xlu0.c.b16.start.end [1/1] (short) (narrow) %v680_v1, 16 }
 0x65e   : > { %1479 = vxpose.xlu0.c.b16.start.end [1/1] (short) (narrow) %v682_v3, 16 }
 0x662   : > { %1511 = vxpose.xlu0.c.b16.start.end [1/1] (short) (narrow) %v684_v5, 16 }
 0x680   : > { %v1356_v27 = vpop.xlane.xlu0 %1355 }
 0x681   : > { %v1364_v48 = vsub.f32 %v3221_v19, %v1356_v27 }
 0x683   : > { %v1369_v57 = vmul.f32 1.442695, %v1364_v48 }
 0x685   : > { %2670 = vpow2.f32 %v1369_v57 }
 0x686   : > { %v1439_v26 = vpop.trf.xlu0  ;;  %2672 = vpow2.f32 %v1371_v60 }
 0x687   : > { %v1535_v15 = vcombine.low %v1439_v26, %v1503_v12 }
 0x689   : > { %v1542_v18 = vrot.slane %v1535_v15, %v3125_v40 }
 0x68b   : > { %v1543_v23 = vcombine.low %v1534_v17, %v1542_v18  ;;  %v1544_v38 = vcombine.high %v1534_v17, %v1542_v18 }
 0x68d   : > { %v1551_v32 = vrot.slane %v1543_v23, %v3130_v49  ;;  %v1558_v52 = vrot.slane %v1544_v38, %v3130_v49 }
 0x68f   : > { %v1599_v39 = vshrl.u32 %v1551_v32, 16  ;;  %v1559_v28 = vcombine.high %v1551_v32, %v2856_v42  ;;  %v1615_v19 = vshrl.u32 %v1558_v52, 16  ;;  %v2671_v14 = vpop.eup %2670  ;;  %v1560_v3 = vcombine.high %v1558_v52, %v2856_v42 }
 0x690   : > { %v2673_v35 = vpop.eup %2672 }
 0x691   : > { %v1607_v51 = vshrl.u32 %v1559_v28, 16  ;;  %v1381_v0 = vsel %vm1165_vm3, %v2673_v35, 0.0  ;;  %v1623_v6 = vshrl.u32 %v1560_v3, 16 }
 0x6ba   : > { %v1362_v11 = vpop.xlane.xlu0 %1361 }
 0x6bb   : > { %v1366_v58 = vsub.f32 %v3223_v24, %v1362_v11  ;;  %v1378_v24 = vsel %vm1165_vm3, %v2671_v14, 0.0 }
 0x6bd   : > { %v1373_v62 = vmul.f32 1.442695, %v1366_v58 }
 0x6bf   : > { %2674 = vpow2.f32 %v1373_v62 }
 0x6c0   : > { %v1455_v16 = vpop.trf.xlu0 }
 0x6c4   : > { %v1487_v20 = vpop.trf.xlu0 }
 0x6c5   : > { %v1561_v21 = vcombine.low %v1423_v22, %v1487_v20 }
 0x6c7   : > { %v1568_v30 = vrot.slane %v1561_v21, %v3125_v40 }
 0x6c8   : > { %v1519_v25 = vpop.trf.xlu0 }
 0x6c9   : > { %v1569_v29 = vcombine.low %v1455_v16, %v1519_v25  ;;  %v2675_v63 = vpop.eup %2674 }
 0x6ca   : > { %v1384_v1 = vsel %vm1165_vm3, %v2675_v63, 0.0 }
 0x6cb   : > { %v1576_v31 = vrot.slane %v1569_v29, %v3125_v40 }
 0x6cd   : > { %v1577_v33 = vcombine.low %v1568_v30, %v1576_v31  ;;  %v1578_v36 = vcombine.high %v1568_v30, %v1576_v31 }
 0x6cf   : > { %v1585_v37 = vrot.slane %v1577_v33, %v3130_v49  ;;  %v1592_v47 = vrot.slane %v1578_v36, %v3130_v49 }
 0x6d1   : > { %v1597_v41 = vpack.i.b16 %v1585_v37, %v1551_v32  ;;  %v1600_v43 = vshrl.u32 %v1585_v37, 16  ;;  %v1593_v44 = vcombine.high %v1585_v37, %v2856_v42  ;;  %v1616_v56 = vshrl.u32 %v1592_v47, 16 }
 0x6d2   : > { %v1613_v59 = vpack.i.b16 %v1592_v47, %v1558_v52  ;;  %v1594_v2 = vcombine.high %v1592_v47, %v2856_v42 }
 0x6d3   : > { %1627 = vxpose.xlu1.c.b16.start.end [1/1] (short) (narrow) %v1597_v41, 16  ;;  %v1601_v45 = vpack.i.b16 %v1600_v43, %v1599_v39  ;;  %v1608_v46 = vshrl.u32 %v1593_v44, 16  ;;  %v1605_v50 = vpack.i.b16 %v1593_v44, %v1559_v28  ;;  %v1617_v61 = vpack.i.b16 %v1616_v56, %v1615_v19 }
 0x6d4   : > { %v1624_v4 = vshrl.u32 %v1594_v2, 16  ;;  %v1621_v5 = vpack.i.b16 %v1594_v2, %v1560_v3 }
 0x6d5   : > { %1643 = vxpose.xlu0.c.b16.start.end [1/1] (short) (narrow) %v1601_v45, 16  ;;  %v1609_v55 = vpack.i.b16 %v1608_v46, %v1607_v51 }
 0x6d6   : > { %v1625_v7 = vpack.i.b16 %v1624_v4, %v1623_v6 }
 0x6d7   : > { %1659 = vxpose.xlu1.c.b16.start.end [1/1] (short) (narrow) %v1605_v50, 16 }
 0x6d9   : > { %1675 = vxpose.xlu0.c.b16.start.end [1/1] (short) (narrow) %v1609_v55, 16 }
 0x6db   : > { %1691 = vxpose.xlu1.c.b16.start.end [1/1] (short) (narrow) %v1613_v59, 16 }
 0x6dd   : > { %1707 = vxpose.xlu0.c.b16.start.end [1/1] (short) (narrow) %v1617_v61, 16 }
 0x6e8   : > { %1376 = vadd.xlane.f32.xlu1 %v1375_v34 }
 0x6ea   : > { %1379 = vadd.xlane.f32.xlu0 %v1378_v24 }
 0x6ec   : > { %1382 = vadd.xlane.f32.xlu1 %v1381_v0 }
 0x6ee   : > { %1385 = vadd.xlane.f32.xlu0 %v1384_v1 }
 0x719   : > { %1723 = vxpose.xlu1.c.b16.start.end [1/1] (short) (narrow) %v1621_v5, 16 }
 0x71b   : > { %1739 = vxpose.xlu0.c.b16.start.end [1/1] (short) (narrow) %v1625_v7, 16 }
 0x739   : > { %v1635_v22 = vpop.trf.xlu1 }
 0x73b   : > { %v1651_v27 = vpop.trf.xlu0 }
 0x73d   : > { %v1667_v9 = vpop.trf.xlu1 }
 0x73f   : > { %v1683_v26 = vpop.trf.xlu0 }
 0x741   : > { %v1699_v11 = vpop.trf.xlu1 }
 0x742   : > { %v1755_v18 = vcombine.low %v1635_v22, %v1699_v11 }
 0x743   : > { %v1715_v12 = vpop.trf.xlu0 }
 0x744   : > { %v1780_v23 = vcombine.low %v1651_v27, %v1715_v12  ;;  %v1762_v32 = vrot.slane %v1755_v18, %v3125_v40 }
 0x746   : > { %v1787_v41 = vrot.slane %v1780_v23, %v3125_v40 }
 0x775   : > { %v1377_v13 = vpop.xlane.xlu1 %1376 }
 0x776   : > { %2676 = vrcp.f32 %v1377_v13 }
 0x777   : > { %v1380_v15 = vpop.xlane.xlu0 %1379 }
 0x778   : > { %2678 = vrcp.f32 %v1380_v15 }
 0x779   : > { %v1383_v16 = vpop.xlane.xlu1 %1382 }
 0x77a   : > { %2680 = vrcp.f32 %v1383_v16 }
 0x77b   : > { %v1386_v17 = vpop.xlane.xlu0 %1385 }
 0x77c   : > { %2682 = vrcp.f32 %v1386_v17 }
 0x77f   : > { %v1731_v20 = vpop.trf.xlu1 }
 0x780   : > { %v2677_v21 = vpop.eup %2676  ;;  %v1763_v25 = vcombine.low %v1667_v9, %v1731_v20 }
 0x781   : > { %v1747_v29 = vpop.trf.xlu0  ;;  %v1391_v30 = vmul.f32 %v2677_v21, %v2669_v10 }
 0x782   : > { %v2679_v31 = vpop.eup %2678  ;;  %v1770_v33 = vrot.slane %v1763_v25, %v3125_v40  ;;  %v1788_v36 = vcombine.low %v1683_v26, %v1747_v29 }
 0x783   : > { %v1395_v37 = vpack.c.bf16 %v1391_v30, %v1391_v30  ;;  %v1392_v38 = vmul.f32 %v2679_v31, %v2671_v14 }
 0x784   : > { %v2681_v39 = vpop.eup %2680  ;;  %v1771_v43 = vcombine.low %v1762_v32, %v1770_v33  ;;  %v1795_v28 = vrot.slane %v1788_v36, %v3125_v40 }
 0x785   : > { %v1821_v44 = vsel %vm1165_vm3, %v1395_v37, 0  ;;  %v1396_v45 = vpack.c.bf16 %v1392_v38, %v1392_v38  ;;  %v1393_v46 = vmul.f32 %v2681_v39, %v2673_v35  ;;  %v2664_v37 = vld [vmem:[#allocation7] sm:$0xff]  }
 0x786   : > { %v2683_v47 = vpop.eup %2682  ;;  %v1778_v48 = vrot.slane %v1771_v43, %v3130_v49  ;;  %v1796_v50 = vcombine.low %v1787_v41, %v1795_v28  ;;  %2549 = vmatpush3.bf16.xpose.msra.mxu0 %v1821_v44 }
 0x787   : > { %v1867_v51 = vsel %vm1165_vm3, %v1396_v45, 0  ;;  %2560 = vmatprep.subr.bf16.mxu0 %v2848_v8  ;;  %v1394_v52 = vmul.f32 %v2683_v47, %v2675_v63  ;;  %v1397_v54 = vpack.c.bf16 %v1393_v46, %v1393_v46  ;;  %v2665_v47 = vld [vmem:[#allocation7 + $0x8] sm:$0xff]  }
 0x788   : > { %v1803_v53 = vrot.slane %v1796_v50, %v3130_v49  ;;  %2555 = vmatpush3.bf16.xpose.msra.mxu1 %v1867_v51  ;;  %v1808_v55 = vshrl.u32 %v1778_v48, 16  ;;  %v1779_v61 = vcombine.high %v1778_v48, %v2856_v42 }
 0x789   : > { %2566 = vmatprep.subr.bf16.mxu1 %v2848_v8  ;;  %v1398_v58 = vpack.c.bf16 %v1394_v52, %v1394_v52  ;;  %v1913_v60 = vsel %vm1165_vm3, %v1397_v54, 0 }
 0x78a   : > { %v1807_v56 = vpack.i.b16 %v1803_v53, %v1778_v48  ;;  %v1809_v57 = vshrl.u32 %v1803_v53, 16  ;;  %v1804_v19 = vcombine.high %v1803_v53, %v2856_v42  ;;  %v1814_v14 = vshrl.u32 %v1779_v61, 16 }
 0x78b   : > { %v1959_v62 = vsel %vm1165_vm3, %v1398_v58, 0 }
 0x78c   : > { %v1810_v59 = vpack.i.b16 %v1809_v57, %v1808_v55  ;;  %v1815_v10 = vshrl.u32 %v1804_v19, 16  ;;  %v1813_v34 = vpack.i.b16 %v1804_v19, %v1779_v61 }
 0x78d   : > { %2551 = vmatmul.mubr.msk.bf16.vlgmr.msra.gmra.mrb[8].mxu0 %vm1165_vm3, %v1807_v56 }
 0x78e   : > { %2561 = vmatpush3.bf16.xpose.msra.mxu0 %v1913_v60  ;;  %2562 = vmatprep.mubr.msk.bf16.mxu0 %vm2849_vm1, %v2848_v8  ;;  %v1816_v35 = vpack.i.b16 %v1815_v10, %v1814_v14 }
 0x78f   : > { %2557 = vmatmul.mubr.msk.bf16.vlgmr.msra.gmra.mrb[12].mxu1 %vm1165_vm3, %v1810_v59  ;;  %2572 = vmatprep.subr.bf16.mxu0 %v2848_v8 }
 0x790   : > { %2567 = vmatpush3.bf16.xpose.msra.mxu1 %v1959_v62  ;;  %2568 = vmatprep.mubr.msk.bf16.mxu1 %vm2849_vm1, %v2848_v8 }
 0x795   : > { %2563 = vmatmul.mubr.msk.bf16.vlgmr.msra.gmra.mrb[12].mxu0 %vm1165_vm3, %v1813_v34 }
 0x796   : > { %2576 = vmatprep.mubr.msk.bf16.mxu0 %vm2849_vm1, %v2848_v8  ;;  %2573 = vmatpush3.bf16.msra.mxu0 %v2664_v37 }
 0x797   : > { %2569 = vmatmul.mubr.msk.bf16.vlgmr.msra.gmra.mrb[16].mxu1 %vm1165_vm3, %v1816_v35  ;;  %2574 = vmatprep.subr.bf16.mxu0 %v2848_v8 }
 0x79a   : > { %2575 = vmatpush3.bf16.msra.mxu0 %v2665_v47 }
 0x860   : > { %v1857_v42 = vpop.f32.mrb[8].mxu0 }
 0x861   : > { %2001 = vxpose.xlu1.b32.start.end [1/1] (short) (narrow) %v1857_v42, 8  ;;  %v2552_v24 = vpop.f32.mrb[9].mxu0 }
 0x862   : > { %v1860_v63 = vpop.f32.mrb[10].mxu0  ;;  %v1903_v0 = vpop.f32.mrb[12].mxu1  ;;  %v2486_v24 = vld [vmem:[%s3374_s4] ss:$0 sm:$0xff] }
 0x863   : > { %2033 = vxpose.xlu0.b32.start.end [1/1] (short) (narrow) %v1903_v0, 8  ;;  %v2553_v1 = vpop.f32.mrb[11].mxu0  ;;  %v2558_v2 = vpop.f32.mrb[13].mxu1 }
 0x864   : > { %v1906_v3 = vpop.f32.mrb[14].mxu1 }
 0x865   : > { %v2559_v4 = vpop.f32.mrb[15].mxu1  ;;  %v2684_v3 = vld [vmem:[%s3077_s29] sm:$0xff]  ;;  %s2861_s29 = smov [#allocation8]  }
 0x868   : > { %v1949_v5 = vpop.f32.mrb[12].mxu0 }
 0x869   : > { %2065 = vxpose.xlu0.b32.start.end [1/1] (short) (narrow) %v1949_v5, 8  ;;  %v2564_v6 = vpop.f32.mrb[13].mxu0 }
 0x86a   : > { %v1952_v7 = vpop.f32.mrb[14].mxu0  ;;  %v1995_v22 = vpop.f32.mrb[16].mxu1 }
 0x86b   : > { %v2565_v27 = vpop.f32.mrb[15].mxu0  ;;  %v2570_v9 = vpop.f32.mrb[17].mxu1 }
 0x86c   : > { %v1998_v26 = vpop.f32.mrb[18].mxu1 }
 0x86d   : > { %v2571_v11 = vpop.f32.mrb[19].mxu1  ;;  %2097 = vxpose.xlu0.b32.start.end [1/1] (short) (narrow) %v1995_v22, 8 }
 0x8e1   : > { %v2017_v15 = vpop.trf.xlu1 }
 0x8e3   : > { %v2049_v12 = vpop.trf.xlu0 }
 0x8e9   : > { %v2081_v13 = vpop.trf.xlu0 }
 0x8ea   : > { %v2129_v16 = vcombine.low %v2017_v15, %v2081_v13  ;;  %v2130_v17 = vcombine.high %v2017_v15, %v2081_v13 }
 0x8ec   : > { %v2137_v23 = vrot.slane %v2129_v16, %v3125_v40  ;;  %v2144_v25 = vrot.slane %v2130_v17, %v3125_v40 }
 0x8ed   : > { %v2113_v18 = vpop.trf.xlu0 }
 0x8ee   : > { %v2145_v20 = vcombine.low %v2049_v12, %v2113_v18  ;;  %v2146_v21 = vcombine.high %v2049_v12, %v2113_v18 }
 0x8f0   : > { %v2153_v29 = vrot.slane %v2145_v20, %v3125_v40  ;;  %v2160_v30 = vrot.slane %v2146_v21, %v3125_v40 }
 0x8f2   : > { %v2161_v31 = vcombine.low %v2137_v23, %v2153_v29  ;;  %v2162_v32 = vcombine.high %v2137_v23, %v2153_v29  ;;  %v2177_v33 = vcombine.low %v2144_v25, %v2160_v30  ;;  %v2178_v36 = vcombine.high %v2144_v25, %v2160_v30 }
 0x8f4   : > { %v2169_v38 = vrot.slane %v2161_v31, %v3130_v49  ;;  %v2176_v39 = vrot.slane %v2162_v32, %v3130_v49  ;;  %v2185_v41 = vrot.slane %v2177_v33, %v3130_v49  ;;  %v2192_v43 = vrot.slane %v2178_v36, %v3130_v49 }
 0x8f6   : > { %v2197_v28 = vcombine.low %v2169_v38, %v2176_v39  ;;  %v2484_v44 = vcombine.high %v2169_v38, %v2176_v39  ;;  %v2213_v45 = vcombine.low %v2185_v41, %v2192_v43  ;;  %v2485_v46 = vcombine.high %v2185_v41, %v2192_v43 }
 0x8f8   : > { %v2204_v48 = vrot.slane %v2197_v28, %v3125_v40  ;;  %v2212_v50 = vrot.slane %v2484_v44, %v3125_v40  ;;  %v2220_v51 = vrot.slane %v2213_v45, %v3125_v40  ;;  %v2228_v52 = vrot.slane %v2485_v46, %v3125_v40 }
 0x8fa   : > { %v2230_v53 = vcombine.high %v2204_v48, %v2212_v50  ;;  %v2246_v54 = vcombine.high %v2220_v51, %v2228_v52  ;;  %v2229_v55 = vcombine.low %v2204_v48, %v2212_v50  ;;  %v2245_v56 = vcombine.low %v2220_v51, %v2228_v52 }
 0x8fc   : > { %v2244_v8 = vrot.slane %v2230_v53, %v3130_v49  ;;  %v2260_v57 = vrot.slane %v2246_v54, %v3130_v49  ;;  %v2237_v58 = vrot.slane %v2229_v55, %v3130_v49  ;;  %v2253_v59 = vrot.slane %v2245_v56, %v3130_v49 }
 0x8fe   : > { %v2263_v19 = vcombine.low %v2244_v8, %v2260_v57  ;;  %v2262_v60 = vcombine.high %v2237_v58, %v2253_v59  ;;  %v2261_v61 = vcombine.low %v2237_v58, %v2253_v59  ;;  %v2264_v40 = vcombine.high %v2244_v8, %v2260_v57 }
 0x900   : > { %2270 = vrot.lane.b32.xlu0 %v2263_v19, %s2858_s30  ;;  %2266 = vrot.lane.b32.xlu1 %v2262_v60, %s2859_s9  ;;  %s2775_s30 = sshll.u32 %s2861_s29, 4  ;;  %s2776_s30 = int_to_ptr.vmem [resolvable:$false] %s2775_s30 }
 0x901   : > { %s2777_s9 = scalar_lea.vmem %s2776_s30, 256  ;;  %p2778_p7 = scmp.lt.s32.totalorder %s3327_s21, %s2776_s30 }
 0x902   : > { %p2779_p9 = scmp.lt.s32.totalorder %s2777_s9, %s2771_s14 }
 0x904   : > { %2274 = vrot.lane.b32.xlu1 %v2264_v40, %s2860_s20  ;;  %p2780_p12 = por %p2779_p9, %p2778_p7 }
 0x906   : > { %p2781_p2 = pnand %p2780_p12, %p2774_p3 }
 0x972   : > { %v2267_v62 = vpop.permute.xlu1 %2266  ;;  %v2271_v10 = vpop.permute.xlu0 %2270 }
 0x973   : > { %v2277_v14 = vsel %vm1165_vm3, %v2261_v61, %v2267_v62 }
 0x974   : > { %v2279_v34 = vsel %vm2278_vm4, %v2277_v14, %v2271_v10 }
 0x976   : > { %v2275_v49 = vpop.permute.xlu1 %2274 }
 0x977   : > { %v2281_v35 = vsel %vm2280_vm5, %v2279_v34, %v2275_v49 }
 0x978   : > { %v2282_v42 = vpack.c.bf16 %v2281_v35, %v2281_v35 }
 0x97a   : > { %2577 = vmatmul.mubr.msk.bf16.vlgmr.msra.gmra.mrb[16].mxu0 %vm327_vm0, %v2282_v42 }
 0xa4d   : > { %v2343_v63 = vpop.f32.mrb[16].mxu0 }
 0xa4e   : > { %v2344_v0 = vadd.f32 %v2486_v24, %v2343_v63  ;;  %v2578_v1 = vpop.f32.mrb[17].mxu0 }
 0xa4f   : > { %v2346_v2 = vpop.f32.mrb[18].mxu0 }
 0xa50   : > { %v2349_v4 = vadd.f32 %v2684_v3, %v2344_v0  ;;  %v2579_v5 = vpop.f32.mrb[19].mxu0 }
 0xa52   : > { %2350 = vst.msk [vmem:[%s322_s18] sm:$0xff] %vm327_vm0, %v2349_v4 }
 0xa53   : > { %2784 = shalt.err (!%p2781_p2)
}
 0xa54   : > { %s2785_s12 = scalar_lea.hbm %s3325_s23, 128  ;;  %s2789_s22 = scalar_lea.hbm %s3377_s7, 256 }
 0xa55   : > { %p2786_p13 = scmp.ne.s32.totalorder %s3325_s23, %s2785_s12  ;;  %p2790_p4 = scmp.lt.u32.totalorder %s3325_s23, %s3377_s7 }
 0xa56   : > { %p2791_p5 = scmp.lt.u32.totalorder %s2789_s22, %s2785_s12  ;;  %p2793_p11 = scmp.lt.u32.totalorder %s2785_s12, %s3325_s23 }
 0xa57   : > { %p2787_p6 = pnand %p2786_p13, %p3391_p0 }
 0xa58   : > { %p2792_p8 = por %p2791_p5, %p2790_p4 }
 0xa59   : > { %p2788_p10 = pneg %p2787_p6 }
 0xa5a   : > { %p2794_p1 = por %p2793_p11, %p2792_p8 }
 0xa5c   : > { %p2795_p3 = pnand %p2794_p1, %p2788_p10 }
 0xa5e   : > { %2798 = shalt.err (!%p2795_p3)
}
 0xa5f   : > { %2590 = dma.vmem_to_hbm [thread:$0]  (%p3391_p0), %s3327_s21, 128, %s3325_s23, %s2352_s28  }
 0xa60 PF: > { %s2377_s15 = sand.u32 1, %s2829_s24   ;;  %p3392_p7 = scmp.ne.s32.totalorder %s3382_s8, 0 }
 0xa61   : > { %p3393_p9 = scmp.ge.s32.totalorder %s2841_s27, 2  ;;  %s2378_s19 = scalar_lea.sflag [#allocation4], %s2377_s15 }
 0xa63   : > { %p2604_p12 = pnand %p3393_p9, %p3392_p7 }
 0xa65   : > { %2824 = dma.done.wait (!%p2604_p12), %s2378_s19, 128  }
 0xa66   : > { %2826 = vsyncadd (!%p2604_p12), %s2378_s19, 4294967168  ;;  %p21_p2 = scmp.ge.s32.totalorder %s3012_s13, 4   ;;  %s3394_s24 = smov %s2833_s25 }
 0xa67   : > { %s3395_s25 = smov %s2837_s26  ;;  %s3396_s26 = smov %s3028_s17 }
 0xa68   : > { %s3397_s27 = smov %s3012_s13  ;;  %23 = sbr.rel (!%p21_p2) target bundleno = 6 (0x6), region = 101 }
 0xa6f   :  { %2383 = vsyncpa [#allocation3], 1 }
 0xa70   :  { %2385 = vsyncpa [#allocation3 + $0x1], 1 }
 0xa71   :  { %2386 = vsyncpa [#allocation6], 1 }
 0xa72   :  { %2387 = vsyncpa [#allocation4], 1 }
 0xa73   :  { %2389 = vsyncpa [#allocation4 + $0x1], 1 }

// kernel: tpu_custom_call.1
= control target key start
LH: loop header
LB: loop body
LE: loop exit
PB: predicated region body
PF: predicated region fallthrough
CT: control target
= control target key end

     0   :  { %12 = vsyncpa [#allocation3], 0  ;;  %s3370_s0 = inlined_call_operand.hbm [shape: f32[16,32], index: 0, kind: input, shape index: {}]   ;;  %s3371_s1 = inlined_call_operand.hbm [shape: bf16[32,96], index: 1, kind: input, shape index: {}]   ;;  %s3372_s2 = inlined_call_operand.vmem [shape: f32[1,96], index: 2, kind: input, shape index: {}]   ;;  %s3373_s3 = inlined_call_operand.hbm [shape: bf16[32,32], index: 3, kind: input, shape index: {}]   ;;  %s3374_s4 = inlined_call_operand.vmem [shape: f32[1,32], index: 4, kind: input, shape index: {}]   ;;  %s3375_s5 = inlined_call_operand.vmem [shape: f32[1,32], index: 5, kind: input, shape index: {}]   ;;  %s3376_s6 = inlined_call_operand.vmem [shape: f32[1,32], index: 6, kind: input, shape index: {}]   ;;  %s3377_s7 = inlined_call_operand.hbm [shape: f32[16,32], index: 7, kind: output, shape index: {}]  }
   0x1   :  { %14 = vsyncpa [#allocation3 + $0x1], 0 }
   0x2   :  { %15 = vsyncpa [#allocation6], 0 }
   0x3   :  { %16 = vsyncpa [#allocation4], 0 }
   0x4   :  { %18 = vsyncpa [#allocation4 + $0x1], 0  ;;  %s2902_s24 = smov 0   ;;  %s2904_s25 = smov 0  }
   0x5   :  { %s2906_s26 = smov 0   ;;  %s2908_s27 = smov 0  }
   0x6 LB: > { %s2923_s28 = sadd.s32 4294967295, %s2841_s27   ;;  %s2454_s29 = sadd.s32 4294967294, %s2841_s27   ;;  %s2841_s27 = sphi %s2908_s27, %s3397_s27   ;;  %s2837_s26 = sphi %s2906_s26, %s3396_s26   ;;  %s2833_s25 = sphi %s2904_s25, %s3395_s25   ;;  %s2829_s24 = sphi %s2902_s24, %s3394_s24  }
   0x7   : > { %p44_p0 = scmp.ne.s32.totalorder %s2833_s25, %s2829_s24  ;;  %p3378_p1 = scmp.eq.s32.totalorder %s2923_s28, 0 }
   0x8   : > { %p200_p3 = scmp.eq.s32.totalorder %s2454_s29, 1  ;;  %p2455_p5 = scmp.ge.s32.totalorder %s2841_s27, 1 }
   0x9   : > { %p2932_p4 = por %p3378_p1, %p44_p0  ;;  %p207_p7 = scmp.lt.s32.totalorder %s2841_s27, 3 }
   0xa   : > { %p2937_p6 = por %p200_p3, %p44_p0  ;;  %s2843_s10 = smov [#allocation5]  }
   0xb   : > { %s3381_s30 = scalar_select %p2932_p4, 1, 0 }
   0xc   : > { %s3382_s8 = scalar_select %p2937_p6, 1, 0 }
   0xd   : > { %p2942_p8 = pnand %p2455_p5, %p207_p7  ;;  %s219_s11 = sshll.u32 %s2843_s10, 4  ;;  %s2946_s11 = int_to_ptr.vmem [resolvable:$true] %s219_s11 }
   0xe   : > { %s2844_s13 = smov [#allocation7]   ;;  %s2685_s17 = scalar_lea.hbm %s3371_s1, 256 }
   0xf   : > { %p2592_p9 = pneg %p2942_p8  ;;  %s235_s14 = sshll.u32 %s2844_s13, 4  ;;  %s2957_s14 = int_to_ptr.vmem [resolvable:$true] %s235_s14 }
  0x10   : > { %p2686_p12 = scmp.ne.s32.totalorder %s3371_s1, %s2685_s17  ;;  %p2692_p5 = scmp.lt.u32.totalorder %s2685_s17, %s3371_s1 }
  0x11   : > { %p2953_p11 = pnand %p2592_p9, %p3378_p1 }
  0x13   : > { %p2687_p13 = pneg %p2953_p11 }
  0x15   : > { %p2688_p0 = pnand %p2687_p13, %p2686_p12 }
  0x17   : > { %p2689_p3 = pneg %p2688_p0 }
  0x19   : > { %p2694_p7 = pnand %p2692_p5, %p2689_p3 }
  0x1b   : > { %2697 = shalt.err (!%p2694_p7)
}
  0x1c   : > { %s2698_s22 = scalar_lea.vmem %s2946_s11, 256  ;;  %p2706_p2 = scmp.lt.s32.totalorder %s2946_s11, %s2946_s11 }
  0x1d   : > { %p2699_p9 = scmp.ne.s32.totalorder %s2946_s11, %s2698_s22  ;;  %p2707_p12 = scmp.lt.s32.totalorder %s2698_s22, %s2698_s22 }
  0x1f   : > { %p2701_p10 = pnand %p2699_p9, %p2687_p13  ;;  %p2708_p0 = por %p2707_p12, %p2706_p2 }
  0x21   : > { %p2702_p1 = pneg %p2701_p10 }
  0x23   : > { %p2709_p6 = pnand %p2708_p0, %p2702_p1 }
  0x25   : > { %2712 = shalt.err (!%p2709_p6)
}
  0x26   : > { %s2845_s23 = smov 64   ;;  %s2846_s29 = smov 4  }
  0x27   : > { %2595 = dma.hbm_to_vmem [thread:$0]  (!%p2953_p11), %s3371_s1, 256, %s2946_s11, [#allocation6], %s2845_s23, %s2845_s23, %s2846_s29  }
  0x28   : > { %s2713_s17 = scalar_lea.hbm %s3373_s3, 256 }
  0x29   : > { %p2714_p2 = scmp.ne.s32.totalorder %s3373_s3, %s2713_s17  ;;  %p2720_p10 = scmp.lt.u32.totalorder %s2713_s17, %s3373_s3 }
  0x2b   : > { %p2716_p1 = pnand %p2714_p2, %p2687_p13 }
  0x2d   : > { %p2717_p6 = pneg %p2716_p1 }
  0x2f   : > { %p2722_p3 = pnand %p2720_p10, %p2717_p6 }
  0x31   : > { %2725 = shalt.err (!%p2722_p3)
}
  0x32   : > { %s2726_s11 = scalar_lea.vmem %s2957_s14, 256  ;;  %p2734_p12 = scmp.lt.s32.totalorder %s2957_s14, %s2957_s14 }
  0x33   : > { %p2727_p5 = scmp.ne.s32.totalorder %s2957_s14, %s2726_s11  ;;  %p2735_p0 = scmp.lt.s32.totalorder %s2726_s11, %s2726_s11 }
  0x35   : > { %p2729_p7 = pnand %p2727_p5, %p2687_p13  ;;  %p2736_p2 = por %p2735_p0, %p2734_p12 }
  0x37   : > { %p2730_p9 = pneg %p2729_p7 }
  0x39   : > { %p2737_p1 = pnand %p2736_p2, %p2730_p9 }
  0x3b   : > { %2740 = shalt.err (!%p2737_p1)
}
  0x3c   : > { %2598 = dma.hbm_to_vmem [thread:$0]  (!%p2953_p11), %s3373_s3, 256, %s2957_s14, [#allocation6], %s2845_s23, %s2845_s23, %s2846_s29  }
  0x3d   : > { %s3012_s13 = sadd.s32 1, %s2841_s27   ;;  %s31_s12 = sadd.s32 1, %s2837_s26 }
  0x3e   : > { %s28_s15 = ssub.s32 %s2841_s27, %s3012_s13  ;;  %p38_p13 = scmp.ne.s32.totalorder %s2837_s26, %s2833_s25 }
  0x3f   : > { %p29_p6 = scmp.eq.s32.totalorder %s28_s15, 0  ;;  %p39_p10 = scmp.eq.s32.totalorder %s2841_s27, 0 }
  0x40   : > { %p3385_p3 = scmp.eq.s32.totalorder %s2923_s28, 1  ;;  %p2609_p7 = scmp.lt.s32.totalorder %s2841_s27, 2 }
  0x41   : > { %s3028_s17 = scalar_select %p29_p6, %s2837_s26, %s31_s12  }
  0x42   : > { %p3022_p5 = por %p3385_p3, %p38_p13  ;;  %p40_p9 = por %p39_p10, %p38_p13 }
  0x43   : > { %s258_s18 = sand.u32 1, %s2837_s26   ;;  %s2460_s14 = sshll.u32 %s2841_s27, 7 }
  0x44   : > { %s3386_s16 = scalar_select %p3022_p5, 1, 0 }
  0x45   : > { %s2459_s19 = sshll.u32 %s258_s18, 3  ;;  %s3035_s20 = scalar_lea.hbm %s3370_s0, %s2460_s14 }
  0x46   : > { %s262_s21 = scalar_lea.vmem [#allocation2], %s2459_s19  ;;  %p3039_p11 = pnand %p2609_p7, %p40_p9 }
  0x47   : > { %s269_s11 = sshll.u32 %s262_s21, 4  ;;  %s259_s10 = scalar_lea.sflag [#allocation3], %s258_s18  ;;  %s3037_s11 = int_to_ptr.vmem [resolvable:$true] %s269_s11 }
  0x48   : > { %s2741_s12 = scalar_lea.hbm %s3035_s20, 128  ;;  %p2743_p0 = pneg %p3039_p11 }
  0x49   : > { %p2742_p12 = scmp.ne.s32.totalorder %s3035_s20, %s2741_s12  ;;  %s2746_s14 = scalar_lea.hbm %s3370_s0, 256 }
  0x4a   : > { %p2747_p13 = scmp.lt.u32.totalorder %s3035_s20, %s3370_s0  ;;  %p2748_p6 = scmp.lt.u32.totalorder %s2746_s14, %s2741_s12 }
  0x4b   : > { %p2744_p2 = pnand %p2743_p0, %p2742_p12  ;;  %p2750_p3 = scmp.lt.u32.totalorder %s2741_s12, %s3035_s20 }
  0x4c   : > { %p2749_p10 = por %p2748_p6, %p2747_p13 }
  0x4d   : > { %p2745_p1 = pneg %p2744_p2 }
  0x4e   : > { %p2751_p7 = por %p2750_p3, %p2749_p10 }
  0x50   : > { %p2752_p9 = pnand %p2751_p7, %p2745_p1 }
  0x52   : > { %2755 = shalt.err (!%p2752_p9)
}
  0x53   : > { %s2756_s18 = scalar_lea.vmem %s3037_s11, 128  ;;  %s2847_s21 = smov [#allocation2]  }
  0x54   : > { %p2757_p12 = scmp.ne.s32.totalorder %s3037_s11, %s2756_s18  ;;  %s2761_s15 = sshll.u32 %s2847_s21, 4  ;;  %s2762_s15 = int_to_ptr.vmem [resolvable:$false] %s2761_s15 }
  0x55   : > { %s2763_s19 = scalar_lea.vmem %s2762_s15, 256  ;;  %p2764_p4 = scmp.lt.s32.totalorder %s3037_s11, %s2762_s15 }
  0x56   : > { %p2759_p2 = pnand %p2757_p12, %p2743_p0  ;;  %p2765_p13 = scmp.lt.s32.totalorder %s2763_s19, %s2756_s18 }
  0x58   : > { %p2760_p5 = pneg %p2759_p2  ;;  %p2766_p6 = por %p2765_p13, %p2764_p4 }
  0x5a   : > { %p2767_p10 = pnand %p2766_p6, %p2760_p5 }
  0x5c   : > { %2770 = shalt.err (!%p2767_p10)
}
  0x5d   : > { %2602 = dma.hbm_to_vmem [thread:$0]  (!%p3039_p11), %s3035_s20, 128, %s3037_s11, %s259_s10  }
  0x5e   : > { %278 = sbr.rel (%p2942_p8) target bundleno = 2656 (0xa60), region = 48  ;;  %s3071_s12 = sand.u32 (!%p2942_p8), 1, %s2833_s25  }
  0x5f   : > { %s2462_s14 = sshll.u32 (!%p2942_p8), %s3071_s12, 3  ;;  %s281_s23 = scalar_lea.sflag (!%p2942_p8), [#allocation3], %s3071_s12 }
  0x60   : > { %s3077_s29 = scalar_lea.vmem (!%p2942_p8), [#allocation2], %s2462_s14  ;;  %p3388_p4 = scmp.ne.s32.totalorder (!%p2942_p8), %s3381_s30, 0 }
  0x65   : > { %2816 = dma.done.wait (%p3388_p4), %s281_s23, 128  }
  0x66   : > { %2818 = vsyncadd (%p3388_p4), %s281_s23, 4294967168  ;;  %p3389_p5 = scmp.eq.s32.totalorder %s2923_s28, 0 }
  0x68   : > { %2820 = dma.done.wait (%p3389_p5), [#allocation6], 512   ;;  %p3390_p8 = pmov %p3389_p5 }
  0x69   : > { %vm327_vm0 = vcmask 261120   ;;  %v324_v0 = vld [vmem:[%s3077_s29] sm:$0xff]  ;;  %v2662_v7 = vld [vmem:[#allocation5] sm:$0xff]   ;;  %v2848_v8 = vmov 0.0   ;;  %vm2849_vm1 = vmmov 0   ;;  %v2663_v9 = vld [vmem:[#allocation5 + $0x8] sm:$0xff]   ;;  %v438_v32 = vlaneseq }
  0x6a   : > { %2822 = vsyncadd (%p3390_p8), [#allocation6], 4294966784  ;;  %v328_v1 = vsel %vm327_vm0, %v324_v0, 0.0  ;;  %2516 = vmatprep.subr.bf16.mxu0 %v2848_v8  ;;  %2520 = vmatprep.mubr.msk.bf16.mxu0 %vm2849_vm1, %v2848_v8  ;;  %v2466_v14 = vld [vmem:[%s3375_s5] ss:$0 sm:$0xff]  ;;  %s2850_s18 = smov 104  }
  0x6b   : > { %329 = vadd.xlane.f32.xlu0 %v328_v1  ;;  %2517 = vmatpush3.bf16.msra.mxu0 %v2662_v7  ;;  %v2467_v16 = vld [vmem:[%s3376_s6] ss:$0 sm:$0xff]  ;;  %s2851_s21 = smov 120   ;;  %s2852_s15 = smov 112   ;;  %v2854_v30 = vmov 1983009808  }
  0x6c   : > { %2524 = vmatprep.subr.bf16.mxu1 %v2848_v8  ;;  %2518 = vmatprep.subr.bf16.mxu0 %v2848_v8  ;;  %v2468_v20 = vld [vmem:[%s3372_s2] ss:$0 sm:$0xff]  ;;  %s2853_s19 = smov 96   ;;  %v436_v31 = vunpack.c.l.s4 %v2854_v30  ;;  %v439_v35 = vshrl.u32 %v438_v32, 7  ;;  %v2855_v37 = vmov 1934713408  }
  0x6d   : > { %2526 = vmatprep.mubr.msk.bf16.mxu1 %vm2849_vm1, %v2848_v8  ;;  %v468_v38 = vunpack.c.l.s4 %v2855_v37  ;;  %s2857_s23 = smov 64   ;;  %vm1169_vm2 = vcmask 1043456   ;;  %vm1165_vm3 = vcmask 64512   ;;  %s2858_s30 = smov 16   ;;  %vm2278_vm4 = vcmask 130048  }
  0x6e   : > { %v437_v34 = vunpack.c.0.s8 %v436_v31  ;;  %s2859_s9 = smov 8   ;;  %s2860_s20 = smov 24   ;;  %vm2280_vm5 = vcmask 195584  }
  0x6f   : > { %2519 = vmatpush3.bf16.msra.mxu0 %v2663_v9  ;;  %v469_v42 = vunpack.c.0.s8 %v468_v38  ;;  %s2491_s10 = sshll.u32 %s2923_s28, 7  ;;  %s2352_s28 = scalar_lea.sflag [#allocation4], %s3071_s12 }
  0x70   : > { %2536 = vmatprep.subr.bf16.mxu0 %v2848_v8  ;;  %v3125_v40 = vsub.s32 %v437_v34, %v439_v35  ;;  %p3391_p0 = scmp.ne.s32.totalorder %s3386_s16, 0 }
  0x71   : > { %v3130_v49 = vsub.s32 %v469_v42, %v439_v35  ;;  %v2856_v42 = vmov 0  }
  0xf8   : > { %v330_v2 = vpop.xlane.xlu0 %329 }
  0xf9   : > { %v332_v3 = vmul.f32 0.03125, %v330_v2 }
  0xfb   : > { %v333_v4 = vsub.f32 %v324_v0, %v332_v3 }
  0xfd   : > { %v334_v5 = vmul.f32 %v333_v4, %v333_v4 }
  0xff   : > { %v335_v6 = vsel %vm327_vm0, %v334_v5, 0.0 }
 0x100   : > { %336 = vadd.xlane.f32.xlu0 %v335_v6 }
 0x18d   : > { %v337_v10 = vpop.xlane.xlu0 %336 }
 0x18e   : > { %v338_v11 = vmul.f32 0.03125, %v337_v10 }
 0x190   : > { %v339_v12 = vadd.f32 1e-05, %v338_v11 }
 0x192   : > { %2666 = vrsqrt.f32 %v339_v12 }
 0x19c   : > { %v2667_v13 = vpop.eup %2666 }
 0x19d   : > { %v341_v15 = vmul.f32 %v2667_v13, %v333_v4 }
 0x19f   : > { %v348_v17 = vmul.f32 %v2466_v14, %v341_v15 }
 0x1a1   : > { %v355_v18 = vadd.f32 %v2467_v16, %v348_v17 }
 0x1a3   : > { %v356_v19 = vpack.c.bf16 %v355_v18, %v355_v18 }
 0x1a5   : > { %2521 = vmatmul.mubr.msk.bf16.vlgmr.msra.gmra.mrb[0].mxu0 %vm327_vm0, %v356_v19 }
 0x1a6   : > { %2538 = vmatprep.mubr.msk.bf16.mxu0 %vm2849_vm1, %v2848_v8 }
 0x278   : > { %v417_v21 = vpop.f32.mrb[0].mxu0 }
 0x279   : > { %v3110_v22 = vadd.f32 %v2468_v20, %v417_v21  ;;  %v2522_v23 = vpop.f32.mrb[1].mxu0 }
 0x27a   : > { %v420_v24 = vpop.f32.mrb[2].mxu0 }
 0x27b   : > { %430 = vrot.lane.b32.xlu0 %v3110_v22, %s2850_s18  ;;  %424 = vrot.lane.b32.xlu1 %v3110_v22, %s2851_s21  ;;  %v2523_v25 = vpop.f32.mrb[3].mxu0  ;;  %s322_s18 = scalar_lea.vmem [#allocation8], %s2462_s14 }
 0x27c   : > { %s2365_s21 = sshll.u32 %s322_s18, 4  ;;  %s3327_s21 = int_to_ptr.vmem [resolvable:$true] %s2365_s21 }
 0x27d   : > { %s2771_s14 = scalar_lea.vmem %s3327_s21, 128 }
 0x27e   : > { %p2772_p11 = scmp.ne.s32.totalorder %s3327_s21, %s2771_s14 }
 0x27f   : > { %427 = vrot.lane.b32.xlu1 %v3110_v22, %s2852_s15 }
 0x280   : > { %p2773_p1 = pnand %p2772_p11, %p3391_p0 }
 0x282   : > { %p2774_p3 = pneg %p2773_p1 }
 0x283   : > { %509 = vrot.lane.b32.xlu1 %v3110_v22, %s2853_s19 }
 0x2ed   : > { %v3116_v26 = vpop.permute.xlu1 %424  ;;  %v3122_v28 = vpop.permute.xlu0 %430 }
 0x2ee   : > { %511 = vrot.lane.b32.xlu1 %v3116_v26, %s2853_s19 }
 0x2f1   : > { %v3119_v27 = vpop.permute.xlu1 %427 }
 0x2f2   : > { %513 = vrot.lane.b32.xlu1 %v3119_v27, %s2853_s19 }
 0x2f5   : > { %v510_v29 = vpop.permute.xlu1 %509 }
 0x2f6   : > { %515 = vrot.lane.b32.xlu1 %v3122_v28, %s2853_s19 }
 0x360   : > { %v512_v33 = vpop.permute.xlu1 %511 }
 0x364   : > { %v514_v36 = vpop.permute.xlu1 %513 }
 0x365   : > { %v521_v39 = vcombine.low %v510_v29, %v514_v36  ;;  %v522_v43 = vcombine.high %v510_v29, %v514_v36 }
 0x367   : > { %v529_v46 = vrot.slane %v521_v39, %v3125_v40  ;;  %v536_v50 = vrot.slane %v522_v43, %v3125_v40 }
 0x368   : > { %v516_v41 = vpop.permute.xlu1 %515 }
 0x369   : > { %v537_v44 = vcombine.low %v512_v33, %v516_v41  ;;  %v538_v45 = vcombine.high %v512_v33, %v516_v41 }
 0x36b   : > { %v545_v47 = vrot.slane %v537_v44, %v3125_v40  ;;  %v552_v48 = vrot.slane %v538_v45, %v3125_v40 }
 0x36d   : > { %v553_v51 = vcombine.low %v529_v46, %v545_v47  ;;  %v554_v52 = vcombine.high %v529_v46, %v545_v47  ;;  %v569_v55 = vcombine.low %v536_v50, %v552_v48  ;;  %v570_v61 = vcombine.high %v536_v50, %v552_v48 }
 0x36f   : > { %v561_v53 = vrot.slane %v553_v51, %v3130_v49  ;;  %v568_v54 = vrot.slane %v554_v52, %v3130_v49  ;;  %v577_v60 = vrot.slane %v569_v55, %v3130_v49  ;;  %v584_v1 = vrot.slane %v570_v61, %v3130_v49 }
 0x370   : > { %v449_v61 = vcombine.low %v3116_v26, %v3122_v28 }
 0x371   : > { %v589_v56 = vpack.c.bf16 %v561_v53, %v561_v53  ;;  %v585_v57 = vcombine.high %v561_v53, %v2848_v8  ;;  %v586_v59 = vcombine.high %v568_v54, %v2848_v8  ;;  %v591_v62 = vpack.c.bf16 %v568_v54, %v568_v54 }
 0x372   : > { %v587_v0 = vcombine.high %v577_v60, %v2848_v8  ;;  %v593_v2 = vpack.c.bf16 %v577_v60, %v577_v60  ;;  %v588_v4 = vcombine.high %v584_v1, %v2848_v8  ;;  %v595_v5 = vpack.c.bf16 %v584_v1, %v584_v1 }
 0x373   : > { %747 = vxpose.xlu1.c.b16.start.end [1/1] (short) (narrow) %v589_v56, 16  ;;  %v590_v58 = vpack.c.bf16 %v585_v57, %v585_v57  ;;  %v592_v63 = vpack.c.bf16 %v586_v59, %v586_v59  ;;  %v433_v59 = vcombine.low %v3110_v22, %v3119_v27  ;;  %v434_v60 = vcombine.high %v3110_v22, %v3119_v27 }
 0x374   : > { %v594_v3 = vpack.c.bf16 %v587_v0, %v587_v0  ;;  %v596_v6 = vpack.c.bf16 %v588_v4, %v588_v4  ;;  %v457_v1 = vrot.slane %v449_v61, %v3125_v40 }
 0x375   : > { %763 = vxpose.xlu0.c.b16.start.end [1/1] (short) (narrow) %v590_v58, 16  ;;  %v448_v0 = vrot.slane %v434_v60, %v3125_v40 }
 0x377   : > { %779 = vxpose.xlu1.c.b16.start.end [1/1] (short) (narrow) %v591_v62, 16  ;;  %v450_v62 = vcombine.high %v3116_v26, %v3122_v28 }
 0x379   : > { %795 = vxpose.xlu0.c.b16.start.end [1/1] (short) (narrow) %v592_v63, 16  ;;  %v441_v63 = vrot.slane %v433_v59, %v3125_v40 }
 0x37b   : > { %811 = vxpose.xlu1.c.b16.start.end [1/1] (short) (narrow) %v593_v2, 16  ;;  %v464_v2 = vrot.slane %v450_v62, %v3125_v40  ;;  %v466_v4 = vcombine.high %v441_v63, %v457_v1 }
 0x37d   : > { %827 = vxpose.xlu0.c.b16.start.end [1/1] (short) (narrow) %v594_v3, 16  ;;  %v465_v3 = vcombine.low %v441_v63, %v457_v1 }
 0x37f   : > { %843 = vxpose.xlu1.c.b16.start.end [1/1] (short) (narrow) %v595_v5, 16  ;;  %v481_v5 = vcombine.low %v448_v0, %v464_v2 }
 0x381   : > { %859 = vxpose.xlu0.c.b16.start.end [1/1] (short) (narrow) %v596_v6, 16  ;;  %v482_v6 = vcombine.high %v448_v0, %v464_v2 }
 0x3d9   : > { %v755_v7 = vpop.trf.xlu1 }
 0x3db   : > { %v771_v9 = vpop.trf.xlu0 }
 0x3dd   : > { %v787_v10 = vpop.trf.xlu1 }
 0x3df   : > { %v803_v11 = vpop.trf.xlu0 }
 0x3e1   : > { %v819_v12 = vpop.trf.xlu1 }
 0x3e2   : > { %v875_v14 = vcombine.low %v755_v7, %v819_v12 }
 0x3e3   : > { %v835_v13 = vpop.trf.xlu0 }
 0x3e4   : > { %v909_v16 = vcombine.low %v771_v9, %v835_v13  ;;  %v882_v19 = vrot.slane %v875_v14, %v3125_v40  ;;  %v489_v9 = vrot.slane %v481_v5, %v3130_v49 }
 0x3e5   : > { %v851_v15 = vpop.trf.xlu1 }
 0x3e6   : > { %v883_v17 = vcombine.low %v787_v10, %v851_v15  ;;  %v916_v23 = vrot.slane %v909_v16, %v3125_v40  ;;  %v499_v14 = vcombine.high %v489_v9, %v2848_v8 }
 0x3e7   : > { %v867_v18 = vpop.trf.xlu0 }
 0x3e8   : > { %v890_v20 = vrot.slane %v883_v17, %v3125_v40  ;;  %v917_v21 = vcombine.low %v803_v11, %v867_v18 }
 0x3ea   : > { %v891_v24 = vcombine.low %v882_v19, %v890_v20  ;;  %v924_v25 = vrot.slane %v917_v21, %v3125_v40  ;;  %v892_v29 = vcombine.high %v882_v19, %v890_v20 }
 0x3ec   : > { %v925_v30 = vcombine.low %v916_v23, %v924_v25  ;;  %v926_v31 = vcombine.high %v916_v23, %v924_v25  ;;  %v899_v32 = vrot.slane %v891_v24, %v3130_v49  ;;  %v906_v38 = vrot.slane %v892_v29, %v3130_v49 }
 0x3ee   : > { %v933_v33 = vrot.slane %v925_v30, %v3130_v49  ;;  %v940_v34 = vrot.slane %v926_v31, %v3130_v49  ;;  %v947_v36 = vshrl.u32 %v899_v32, 16  ;;  %v963_v45 = vshrl.u32 %v906_v38, 16 }
 0x3ef   : > { %v907_v46 = vcombine.high %v899_v32, %v2856_v42  ;;  %v908_v53 = vcombine.high %v906_v38, %v2856_v42 }
 0x3f0   : > { %v945_v35 = vpack.i.b16 %v933_v33, %v899_v32  ;;  %v948_v37 = vshrl.u32 %v933_v33, 16  ;;  %v964_v41 = vshrl.u32 %v940_v34, 16  ;;  %v941_v43 = vcombine.high %v933_v33, %v2856_v42 }
 0x3f1   : > { %v961_v44 = vpack.i.b16 %v940_v34, %v906_v38  ;;  %v942_v50 = vcombine.high %v940_v34, %v2856_v42  ;;  %v955_v52 = vshrl.u32 %v907_v46, 16  ;;  %v971_v57 = vshrl.u32 %v908_v53, 16 }
 0x3f2   : > { %975 = vxpose.xlu1.c.b16.start.end [1/1] (short) (narrow) %v945_v35, 16  ;;  %v949_v39 = vpack.i.b16 %v948_v37, %v947_v36  ;;  %v965_v47 = vpack.i.b16 %v964_v41, %v963_v45  ;;  %v956_v48 = vshrl.u32 %v941_v43, 16  ;;  %v953_v51 = vpack.i.b16 %v941_v43, %v907_v46 }
 0x3f3   : > { %v972_v55 = vshrl.u32 %v942_v50, 16  ;;  %v969_v56 = vpack.i.b16 %v942_v50, %v908_v53 }
 0x3f4   : > { %991 = vxpose.xlu0.c.b16.start.end [1/1] (short) (narrow) %v949_v39, 16  ;;  %v957_v54 = vpack.i.b16 %v956_v48, %v955_v52 }
 0x3f5   : > { %v973_v58 = vpack.i.b16 %v972_v55, %v971_v57 }
 0x3f6   : > { %1039 = vxpose.xlu1.c.b16.start.end [1/1] (short) (narrow) %v961_v44, 16 }
 0x3f8   : > { %1055 = vxpose.xlu0.c.b16.start.end [1/1] (short) (narrow) %v965_v47, 16 }
 0x3fa   : > { %1007 = vxpose.xlu1.c.b16.start.end [1/1] (short) (narrow) %v953_v51, 16 }
 0x3fc   : > { %1023 = vxpose.xlu0.c.b16.start.end [1/1] (short) (narrow) %v957_v54, 16 }
 0x3fe   : > { %1071 = vxpose.xlu1.c.b16.start.end [1/1] (short) (narrow) %v969_v56, 16 }
 0x400   : > { %1087 = vxpose.xlu0.c.b16.start.end [1/1] (short) (narrow) %v973_v58, 16 }
 0x402   : > { %597 = vrot.lane.b32.xlu1 %v3110_v22, %s2857_s23  ;;  %v473_v22 = vrot.slane %v465_v3, %v3130_v49 }
 0x404   : > { %v497_v12 = vcombine.high %v473_v22, %v2848_v8  ;;  %v2472_v20 = vpack.c.bf16 %v489_v9, %v473_v22 }
 0x406   : > { %601 = vrot.lane.b32.xlu1 %v3119_v27, %s2857_s23  ;;  %v480_v27 = vrot.slane %v466_v4, %v3130_v49  ;;  %v2474_v18 = vpack.c.bf16 %v499_v14, %v497_v12  ;;  %v692_v33 = vrot.slane %v2472_v20, %v3125_v40 }
 0x408   : > { %v498_v13 = vcombine.high %v480_v27, %v2848_v8  ;;  %v717_v31 = vrot.slane %v2474_v18, %v3125_v40 }
 0x409   : > { %599 = vrot.lane.b32.xlu0 %v3116_v26, %s2857_s23  ;;  %v496_v26 = vrot.slane %v482_v6, %v3130_v49 }
 0x40b   : > { %v500_v15 = vcombine.high %v496_v26, %v2848_v8  ;;  %v2473_v21 = vpack.c.bf16 %v496_v26, %v480_v27 }
 0x40d   : > { %v2475_v19 = vpack.c.bf16 %v500_v15, %v498_v13  ;;  %v700_v34 = vrot.slane %v2473_v21, %v3125_v40 }
 0x40f   : > { %v725_v32 = vrot.slane %v2475_v19, %v3125_v40  ;;  %v701_v45 = vcombine.low %v692_v33, %v700_v34 }
 0x411   : > { %v726_v44 = vcombine.low %v717_v31, %v725_v32  ;;  %v708_v52 = vrot.slane %v701_v45, %v3130_v49 }
 0x413   : > { %v733_v50 = vrot.slane %v726_v44, %v3130_v49  ;;  %v709_v63 = vcombine.high %v708_v52, %v2856_v42  ;;  %v738_v5 = vshrl.u32 %v708_v52, 16 }
 0x415   : > { %v734_v60 = vcombine.high %v733_v50, %v2856_v42  ;;  %v737_v62 = vpack.i.b16 %v733_v50, %v708_v52  ;;  %v739_v3 = vshrl.u32 %v733_v50, 16  ;;  %v744_v9 = vshrl.u32 %v709_v63, 16 }
 0x417   : > { %v743_v1 = vpack.i.b16 %v734_v60, %v709_v63  ;;  %v745_v27 = vshrl.u32 %v734_v60, 16 }
 0x419   : > { %v746_v26 = vpack.i.b16 %v745_v27, %v744_v9 }
 0x458   : > { %v983_v7 = vpop.trf.xlu1 }
 0x45a   : > { %v999_v10 = vpop.trf.xlu0 }
 0x45c   : > { %v1047_v11 = vpop.trf.xlu1 }
 0x45d   : > { %v1103_v24 = vcombine.low %v983_v7, %v1047_v11  ;;  %v740_v7 = vpack.i.b16 %v739_v3, %v738_v5 }
 0x45e   : > { %v1063_v16 = vpop.trf.xlu0 }
 0x45f   : > { %v1128_v29 = vcombine.low %v999_v10, %v1063_v16  ;;  %v1110_v36 = vrot.slane %v1103_v24, %v3125_v40 }
 0x460   : > { %v1015_v17 = vpop.trf.xlu1 }
 0x461   : > { %v1135_v39 = vrot.slane %v1128_v29, %v3125_v40 }
 0x462   : > { %v1031_v23 = vpop.trf.xlu0 }
 0x464   : > { %v1079_v25 = vpop.trf.xlu1 }
 0x465   : > { %v1111_v30 = vcombine.low %v1015_v17, %v1079_v25 }
 0x466   : > { %v1095_v35 = vpop.trf.xlu0 }
 0x467   : > { %v1118_v37 = vrot.slane %v1111_v30, %v3125_v40  ;;  %v1136_v38 = vcombine.low %v1031_v23, %v1095_v35 }
 0x469   : > { %v1119_v41 = vcombine.low %v1110_v36, %v1118_v37  ;;  %v1143_v43 = vrot.slane %v1136_v38, %v3125_v40 }
 0x46b   : > { %v1126_v46 = vrot.slane %v1119_v41, %v3130_v49  ;;  %v1144_v47 = vcombine.low %v1135_v39, %v1143_v43 }
 0x46d   : > { %v1151_v48 = vrot.slane %v1144_v47, %v3130_v49  ;;  %v1127_v51 = vcombine.high %v1126_v46, %v2856_v42  ;;  %v1156_v55 = vshrl.u32 %v1126_v46, 16 }
 0x46f   : > { %v1155_v53 = vpack.i.b16 %v1151_v48, %v1126_v46  ;;  %v1152_v54 = vcombine.high %v1151_v48, %v2856_v42  ;;  %v1157_v56 = vshrl.u32 %v1151_v48, 16  ;;  %v1162_v4 = vshrl.u32 %v1127_v51, 16 }
 0x471   : > { %v1171_v57 = vsel %vm1169_vm2, %v1155_v53, 0  ;;  %v1161_v58 = vpack.i.b16 %v1152_v54, %v1127_v51  ;;  %v1158_v59 = vpack.i.b16 %v1157_v56, %v1156_v55  ;;  %v1163_v2 = vshrl.u32 %v1152_v54, 16 }
 0x472   : > { %2525 = vmatpush3.bf16.msra.mxu1 %v1171_v57 }
 0x473   : > { %v1263_v61 = vsel %vm1169_vm2, %v1161_v58, 0  ;;  %2530 = vmatprep.subr.bf16.mxu1 %v2848_v8  ;;  %v1217_v0 = vsel %vm1169_vm2, %v1158_v59, 0  ;;  %v1164_v6 = vpack.i.b16 %v1163_v2, %v1162_v4 }
 0x474   : > { %2537 = vmatpush3.bf16.msra.mxu0 %v1263_v61  ;;  %v598_v32 = vpop.permute.xlu1 %597 }
 0x475   : > { %2527 = vmatmul.mubr.msk.bf16.vlgmr.msra.gmra.mrb[0].mxu1 %vm1165_vm3, %v737_v62  ;;  %2548 = vmatprep.subr.bf16.mxu0 %v2848_v8  ;;  %v1309_v22 = vsel %vm1169_vm2, %v1164_v6, 0 }
 0x476   : > { %2531 = vmatpush3.bf16.msra.mxu1 %v1217_v0  ;;  %2532 = vmatprep.mubr.msk.bf16.mxu1 %vm2849_vm1, %v2848_v8 }
 0x477   : > { %2539 = vmatmul.mubr.msk.bf16.vlgmr.msra.gmra.mrb[4].mxu0 %vm1165_vm3, %v743_v1  ;;  %2542 = vmatprep.subr.bf16.mxu1 %v2848_v8 }
 0x478   : > { %2550 = vmatprep.mubr.msk.bf16.mxu0 %vm2849_vm1, %v2848_v8  ;;  %v602_v33 = vpop.permute.xlu1 %601 }
 0x479   : > { %v609_v36 = vcombine.low %v598_v32, %v602_v33  ;;  %v610_v39 = vcombine.high %v598_v32, %v602_v33 }
 0x47b   : > { %v600_v37 = vpop.permute.xlu0 %599  ;;  %v624_v46 = vrot.slane %v610_v39, %v3125_v40 }
 0x47d   : > { %2533 = vmatmul.mubr.msk.bf16.vlgmr.msra.gmra.mrb[4].mxu1 %vm1165_vm3, %v740_v7 }
 0x47e   : > { %2543 = vmatpush3.bf16.msra.mxu1 %v1309_v22  ;;  %2544 = vmatprep.mubr.msk.bf16.mxu1 %vm2849_vm1, %v2848_v8 }
 0x47f   : > { %2554 = vmatprep.subr.bf16.mxu1 %v2848_v8 }
 0x485   : > { %2545 = vmatmul.mubr.msk.bf16.vlgmr.msra.gmra.mrb[8].mxu1 %vm1165_vm3, %v746_v26 }
 0x486   : > { %2556 = vmatprep.mubr.msk.bf16.mxu1 %vm2849_vm1, %v2848_v8 }
 0x548   : > { %v3215_v10 = vpop.f32.mrb[0].mxu1 }
 0x549   : > { %v2528_v11 = vpop.f32.mrb[1].mxu1  ;;  %v1351_v12 = vsel %vm1165_vm3, %v3215_v10, -inf }
 0x54a   : > { %1352 = vmax.xlane.f32.xlu1 %v1351_v12  ;;  %v1210_v13 = vpop.f32.mrb[2].mxu1  ;;  %v3219_v14 = vpop.f32.mrb[4].mxu0 }
 0x54b   : > { %v2529_v15 = vpop.f32.mrb[3].mxu1  ;;  %v2540_v16 = vpop.f32.mrb[5].mxu0  ;;  %v1357_v31 = vsel %vm1165_vm3, %v3219_v14, -inf }
 0x54c   : > { %v1302_v17 = vpop.f32.mrb[6].mxu0 }
 0x54d   : > { %v2541_v18 = vpop.f32.mrb[7].mxu0 }
 0x550   : > { %v3221_v19 = vpop.f32.mrb[4].mxu1 }
 0x551   : > { %v2534_v20 = vpop.f32.mrb[5].mxu1  ;;  %v1354_v59 = vsel %vm1165_vm3, %v3221_v19, -inf }
 0x552   : > { %v1256_v21 = vpop.f32.mrb[6].mxu1 }
 0x553   : > { %v2535_v23 = vpop.f32.mrb[7].mxu1 }
 0x558   : > { %v3223_v24 = vpop.f32.mrb[8].mxu1 }
 0x559   : > { %v2546_v25 = vpop.f32.mrb[9].mxu1  ;;  %v1360_v63 = vsel %vm1165_vm3, %v3223_v24, -inf }
 0x55a   : > { %v1348_v29 = vpop.f32.mrb[10].mxu1 }
 0x55b   : > { %603 = vrot.lane.b32.xlu1 %v3122_v28, %s2857_s23  ;;  %v2547_v30 = vpop.f32.mrb[11].mxu1  ;;  %v617_v28 = vrot.slane %v609_v36, %v3125_v40  ;;  %s3325_s23 = scalar_lea.hbm %s3377_s7, %s2491_s10 }
 0x57f   : > { %1358 = vmax.xlane.f32.xlu1 %v1357_v31 }
 0x5d7   : > { %v3229_v34 = vpop.xlane.xlu1 %1352 }
 0x5d8   : > { %v1363_v35 = vsub.f32 %v3215_v10, %v3229_v34 }
 0x5db   : > { %v604_v38 = vpop.permute.xlu1 %603 }
 0x5dc   : > { %v625_v41 = vcombine.low %v600_v37, %v604_v38  ;;  %v626_v43 = vcombine.high %v600_v37, %v604_v38 }
 0x5de   : > { %v633_v44 = vrot.slane %v625_v41, %v3125_v40  ;;  %v640_v45 = vrot.slane %v626_v43, %v3125_v40 }
 0x5e0   : > { %v641_v47 = vcombine.low %v617_v28, %v633_v44  ;;  %v657_v50 = vcombine.low %v624_v46, %v640_v45  ;;  %v658_v55 = vcombine.high %v624_v46, %v640_v45  ;;  %v642_v60 = vcombine.high %v617_v28, %v633_v44 }
 0x5e2   : > { %v649_v48 = vrot.slane %v641_v47, %v3130_v49  ;;  %v665_v54 = vrot.slane %v657_v50, %v3130_v49  ;;  %v672_v57 = vrot.slane %v658_v55, %v3130_v49  ;;  %v656_v61 = vrot.slane %v642_v60, %v3130_v49 }
 0x5e4   : > { %v677_v51 = vpack.c.bf16 %v649_v48, %v649_v48  ;;  %v673_v52 = vcombine.high %v649_v48, %v2848_v8  ;;  %v681_v56 = vpack.c.bf16 %v665_v54, %v665_v54  ;;  %v683_v58 = vpack.c.bf16 %v672_v57, %v672_v57 }
 0x5e5   : > { %v679_v62 = vpack.c.bf16 %v656_v61, %v656_v61  ;;  %v674_v0 = vcombine.high %v656_v61, %v2848_v8  ;;  %v675_v2 = vcombine.high %v665_v54, %v2848_v8  ;;  %v676_v4 = vcombine.high %v672_v57, %v2848_v8 }
 0x5e6   : > { %1399 = vxpose.xlu0.c.b16.start.end [1/1] (short) (narrow) %v677_v51, 16  ;;  %v678_v53 = vpack.c.bf16 %v673_v52, %v673_v52 }
 0x5e7   : > { %v680_v1 = vpack.c.bf16 %v674_v0, %v674_v0  ;;  %v682_v3 = vpack.c.bf16 %v675_v2, %v675_v2  ;;  %v684_v5 = vpack.c.bf16 %v676_v4, %v676_v4 }
 0x5e8   : > { %1415 = vxpose.xlu1.c.b16.start.end [1/1] (short) (narrow) %v678_v53, 16  ;;  %v1367_v53 = vmul.f32 1.442695, %v1363_v35 }
 0x5ea   : > { %2668 = vpow2.f32 %v1367_v53 }
 0x5ec   : > { %1463 = vxpose.xlu1.c.b16.start.end [1/1] (short) (narrow) %v681_v56, 16 }
 0x5f0   : > { %1495 = vxpose.xlu1.c.b16.start.end [1/1] (short) (narrow) %v683_v58, 16 }
 0x5f3   : > { %1355 = vmax.xlane.f32.xlu0 %v1354_v59 }
 0x5f4   : > { %v2669_v10 = vpop.eup %2668 }
 0x5f5   : > { %v1375_v34 = vsel %vm1165_vm3, %v2669_v10, 0.0 }
 0x60c   : > { %v1359_v6 = vpop.xlane.xlu1 %1358 }
 0x60d   : > { %v1365_v54 = vsub.f32 %v3219_v14, %v1359_v6 }
 0x60f   : > { %v1371_v60 = vmul.f32 1.442695, %v1365_v54 }
 0x620   : > { %1431 = vxpose.xlu0.c.b16.start.end [1/1] (short) (narrow) %v679_v62, 16 }
 0x62d   : > { %1361 = vmax.xlane.f32.xlu0 %v1360_v63 }
 0x64c   : > { %v1407_v7 = vpop.trf.xlu0 }
 0x64e   : > { %v1423_v22 = vpop.trf.xlu1 }
 0x652   : > { %v1471_v9 = vpop.trf.xlu1 }
 0x653   : > { %v1527_v13 = vcombine.low %v1407_v7, %v1471_v9 }
 0x655   : > { %v1534_v17 = vrot.slane %v1527_v13, %v3125_v40 }
 0x656   : > { %v1503_v12 = vpop.trf.xlu1 }
 0x65a   : > { %1447 = vxpose.xlu0.c.b16.start.end [1/1] (short) (narrow) %v680_v1, 16 }
 0x65e   : > { %1479 = vxpose.xlu0.c.b16.start.end [1/1] (short) (narrow) %v682_v3, 16 }
 0x662   : > { %1511 = vxpose.xlu0.c.b16.start.end [1/1] (short) (narrow) %v684_v5, 16 }
 0x680   : > { %v1356_v27 = vpop.xlane.xlu0 %1355 }
 0x681   : > { %v1364_v48 = vsub.f32 %v3221_v19, %v1356_v27 }
 0x683   : > { %v1369_v57 = vmul.f32 1.442695, %v1364_v48 }
 0x685   : > { %2670 = vpow2.f32 %v1369_v57 }
 0x686   : > { %v1439_v26 = vpop.trf.xlu0  ;;  %2672 = vpow2.f32 %v1371_v60 }
 0x687   : > { %v1535_v15 = vcombine.low %v1439_v26, %v1503_v12 }
 0x689   : > { %v1542_v18 = vrot.slane %v1535_v15, %v3125_v40 }
 0x68b   : > { %v1543_v23 = vcombine.low %v1534_v17, %v1542_v18  ;;  %v1544_v38 = vcombine.high %v1534_v17, %v1542_v18 }
 0x68d   : > { %v1551_v32 = vrot.slane %v1543_v23, %v3130_v49  ;;  %v1558_v52 = vrot.slane %v1544_v38, %v3130_v49 }
 0x68f   : > { %v1599_v39 = vshrl.u32 %v1551_v32, 16  ;;  %v1559_v28 = vcombine.high %v1551_v32, %v2856_v42  ;;  %v1615_v19 = vshrl.u32 %v1558_v52, 16  ;;  %v2671_v14 = vpop.eup %2670  ;;  %v1560_v3 = vcombine.high %v1558_v52, %v2856_v42 }
 0x690   : > { %v2673_v35 = vpop.eup %2672 }
 0x691   : > { %v1607_v51 = vshrl.u32 %v1559_v28, 16  ;;  %v1381_v0 = vsel %vm1165_vm3, %v2673_v35, 0.0  ;;  %v1623_v6 = vshrl.u32 %v1560_v3, 16 }
 0x6ba   : > { %v1362_v11 = vpop.xlane.xlu0 %1361 }
 0x6bb   : > { %v1366_v58 = vsub.f32 %v3223_v24, %v1362_v11  ;;  %v1378_v24 = vsel %vm1165_vm3, %v2671_v14, 0.0 }
 0x6bd   : > { %v1373_v62 = vmul.f32 1.442695, %v1366_v58 }
 0x6bf   : > { %2674 = vpow2.f32 %v1373_v62 }
 0x6c0   : > { %v1455_v16 = vpop.trf.xlu0 }
 0x6c4   : > { %v1487_v20 = vpop.trf.xlu0 }
 0x6c5   : > { %v1561_v21 = vcombine.low %v1423_v22, %v1487_v20 }
 0x6c7   : > { %v1568_v30 = vrot.slane %v1561_v21, %v3125_v40 }
 0x6c8   : > { %v1519_v25 = vpop.trf.xlu0 }
 0x6c9   : > { %v1569_v29 = vcombine.low %v1455_v16, %v1519_v25  ;;  %v2675_v63 = vpop.eup %2674 }
 0x6ca   : > { %v1384_v1 = vsel %vm1165_vm3, %v2675_v63, 0.0 }
 0x6cb   : > { %v1576_v31 = vrot.slane %v1569_v29, %v3125_v40 }
 0x6cd   : > { %v1577_v33 = vcombine.low %v1568_v30, %v1576_v31  ;;  %v1578_v36 = vcombine.high %v1568_v30, %v1576_v31 }
 0x6cf   : > { %v1585_v37 = vrot.slane %v1577_v33, %v3130_v49  ;;  %v1592_v47 = vrot.slane %v1578_v36, %v3130_v49 }
 0x6d1   : > { %v1597_v41 = vpack.i.b16 %v1585_v37, %v1551_v32  ;;  %v1600_v43 = vshrl.u32 %v1585_v37, 16  ;;  %v1593_v44 = vcombine.high %v1585_v37, %v2856_v42  ;;  %v1616_v56 = vshrl.u32 %v1592_v47, 16 }
 0x6d2   : > { %v1613_v59 = vpack.i.b16 %v1592_v47, %v1558_v52  ;;  %v1594_v2 = vcombine.high %v1592_v47, %v2856_v42 }
 0x6d3   : > { %1627 = vxpose.xlu1.c.b16.start.end [1/1] (short) (narrow) %v1597_v41, 16  ;;  %v1601_v45 = vpack.i.b16 %v1600_v43, %v1599_v39  ;;  %v1608_v46 = vshrl.u32 %v1593_v44, 16  ;;  %v1605_v50 = vpack.i.b16 %v1593_v44, %v1559_v28  ;;  %v1617_v61 = vpack.i.b16 %v1616_v56, %v1615_v19 }
 0x6d4   : > { %v1624_v4 = vshrl.u32 %v1594_v2, 16  ;;  %v1621_v5 = vpack.i.b16 %v1594_v2, %v1560_v3 }
 0x6d5   : > { %1643 = vxpose.xlu0.c.b16.start.end [1/1] (short) (narrow) %v1601_v45, 16  ;;  %v1609_v55 = vpack.i.b16 %v1608_v46, %v1607_v51 }
 0x6d6   : > { %v1625_v7 = vpack.i.b16 %v1624_v4, %v1623_v6 }
 0x6d7   : > { %1659 = vxpose.xlu1.c.b16.start.end [1/1] (short) (narrow) %v1605_v50, 16 }
 0x6d9   : > { %1675 = vxpose.xlu0.c.b16.start.end [1/1] (short) (narrow) %v1609_v55, 16 }
 0x6db   : > { %1691 = vxpose.xlu1.c.b16.start.end [1/1] (short) (narrow) %v1613_v59, 16 }
 0x6dd   : > { %1707 = vxpose.xlu0.c.b16.start.end [1/1] (short) (narrow) %v1617_v61, 16 }
 0x6e8   : > { %1376 = vadd.xlane.f32.xlu1 %v1375_v34 }
 0x6ea   : > { %1379 = vadd.xlane.f32.xlu0 %v1378_v24 }
 0x6ec   : > { %1382 = vadd.xlane.f32.xlu1 %v1381_v0 }
 0x6ee   : > { %1385 = vadd.xlane.f32.xlu0 %v1384_v1 }
 0x719   : > { %1723 = vxpose.xlu1.c.b16.start.end [1/1] (short) (narrow) %v1621_v5, 16 }
 0x71b   : > { %1739 = vxpose.xlu0.c.b16.start.end [1/1] (short) (narrow) %v1625_v7, 16 }
 0x739   : > { %v1635_v22 = vpop.trf.xlu1 }
 0x73b   : > { %v1651_v27 = vpop.trf.xlu0 }
 0x73d   : > { %v1667_v9 = vpop.trf.xlu1 }
 0x73f   : > { %v1683_v26 = vpop.trf.xlu0 }
 0x741   : > { %v1699_v11 = vpop.trf.xlu1 }
 0x742   : > { %v1755_v18 = vcombine.low %v1635_v22, %v1699_v11 }
 0x743   : > { %v1715_v12 = vpop.trf.xlu0 }
 0x744   : > { %v1780_v23 = vcombine.low %v1651_v27, %v1715_v12  ;;  %v1762_v32 = vrot.slane %v1755_v18, %v3125_v40 }
 0x746   : > { %v1787_v41 = vrot.slane %v1780_v23, %v3125_v40 }
 0x775   : > { %v1377_v13 = vpop.xlane.xlu1 %1376 }
 0x776   : > { %2676 = vrcp.f32 %v1377_v13 }
 0x777   : > { %v1380_v15 = vpop.xlane.xlu0 %1379 }
 0x778   : > { %2678 = vrcp.f32 %v1380_v15 }
 0x779   : > { %v1383_v16 = vpop.xlane.xlu1 %1382 }
 0x77a   : > { %2680 = vrcp.f32 %v1383_v16 }
 0x77b   : > { %v1386_v17 = vpop.xlane.xlu0 %1385 }
 0x77c   : > { %2682 = vrcp.f32 %v1386_v17 }
 0x77f   : > { %v1731_v20 = vpop.trf.xlu1 }
 0x780   : > { %v2677_v21 = vpop.eup %2676  ;;  %v1763_v25 = vcombine.low %v1667_v9, %v1731_v20 }
 0x781   : > { %v1747_v29 = vpop.trf.xlu0  ;;  %v1391_v30 = vmul.f32 %v2677_v21, %v2669_v10 }
 0x782   : > { %v2679_v31 = vpop.eup %2678  ;;  %v1770_v33 = vrot.slane %v1763_v25, %v3125_v40  ;;  %v1788_v36 = vcombine.low %v1683_v26, %v1747_v29 }
 0x783   : > { %v1395_v37 = vpack.c.bf16 %v1391_v30, %v1391_v30  ;;  %v1392_v38 = vmul.f32 %v2679_v31, %v2671_v14 }
 0x784   : > { %v2681_v39 = vpop.eup %2680  ;;  %v1771_v43 = vcombine.low %v1762_v32, %v1770_v33  ;;  %v1795_v28 = vrot.slane %v1788_v36, %v3125_v40 }
 0x785   : > { %v1821_v44 = vsel %vm1165_vm3, %v1395_v37, 0  ;;  %v1396_v45 = vpack.c.bf16 %v1392_v38, %v1392_v38  ;;  %v1393_v46 = vmul.f32 %v2681_v39, %v2673_v35  ;;  %v2664_v37 = vld [vmem:[#allocation7] sm:$0xff]  }
 0x786   : > { %v2683_v47 = vpop.eup %2682  ;;  %v1778_v48 = vrot.slane %v1771_v43, %v3130_v49  ;;  %v1796_v50 = vcombine.low %v1787_v41, %v1795_v28  ;;  %2549 = vmatpush3.bf16.xpose.msra.mxu0 %v1821_v44 }
 0x787   : > { %v1867_v51 = vsel %vm1165_vm3, %v1396_v45, 0  ;;  %2560 = vmatprep.subr.bf16.mxu0 %v2848_v8  ;;  %v1394_v52 = vmul.f32 %v2683_v47, %v2675_v63  ;;  %v1397_v54 = vpack.c.bf16 %v1393_v46, %v1393_v46  ;;  %v2665_v47 = vld [vmem:[#allocation7 + $0x8] sm:$0xff]  }
 0x788   : > { %v1803_v53 = vrot.slane %v1796_v50, %v3130_v49  ;;  %2555 = vmatpush3.bf16.xpose.msra.mxu1 %v1867_v51  ;;  %v1808_v55 = vshrl.u32 %v1778_v48, 16  ;;  %v1779_v61 = vcombine.high %v1778_v48, %v2856_v42 }
 0x789   : > { %2566 = vmatprep.subr.bf16.mxu1 %v2848_v8  ;;  %v1398_v58 = vpack.c.bf16 %v1394_v52, %v1394_v52  ;;  %v1913_v60 = vsel %vm1165_vm3, %v1397_v54, 0 }
 0x78a   : > { %v1807_v56 = vpack.i.b16 %v1803_v53, %v1778_v48  ;;  %v1809_v57 = vshrl.u32 %v1803_v53, 16  ;;  %v1804_v19 = vcombine.high %v1803_v53, %v2856_v42  ;;  %v1814_v14 = vshrl.u32 %v1779_v61, 16 }
 0x78b   : > { %v1959_v62 = vsel %vm1165_vm3, %v1398_v58, 0 }
 0x78c   : > { %v1810_v59 = vpack.i.b16 %v1809_v57, %v1808_v55  ;;  %v1815_v10 = vshrl.u32 %v1804_v19, 16  ;;  %v1813_v34 = vpack.i.b16 %v1804_v19, %v1779_v61 }
 0x78d   : > { %2551 = vmatmul.mubr.msk.bf16.vlgmr.msra.gmra.mrb[8].mxu0 %vm1165_vm3, %v1807_v56 }
 0x78e   : > { %2561 = vmatpush3.bf16.xpose.msra.mxu0 %v1913_v60  ;;  %2562 = vmatprep.mubr.msk.bf16.mxu0 %vm2849_vm1, %v2848_v8  ;;  %v1816_v35 = vpack.i.b16 %v1815_v10, %v1814_v14 }
 0x78f   : > { %2557 = vmatmul.mubr.msk.bf16.vlgmr.msra.gmra.mrb[12].mxu1 %vm1165_vm3, %v1810_v59  ;;  %2572 = vmatprep.subr.bf16.mxu0 %v2848_v8 }
 0x790   : > { %2567 = vmatpush3.bf16.xpose.msra.mxu1 %v1959_v62  ;;  %2568 = vmatprep.mubr.msk.bf16.mxu1 %vm2849_vm1, %v2848_v8 }
 0x795   : > { %2563 = vmatmul.mubr.msk.bf16.vlgmr.msra.gmra.mrb[12].mxu0 %vm1165_vm3, %v1813_v34 }
 0x796   : > { %2576 = vmatprep.mubr.msk.bf16.mxu0 %vm2849_vm1, %v2848_v8  ;;  %2573 = vmatpush3.bf16.msra.mxu0 %v2664_v37 }
 0x797   : > { %2569 = vmatmul.mubr.msk.bf16.vlgmr.msra.gmra.mrb[16].mxu1 %vm1165_vm3, %v1816_v35  ;;  %2574 = vmatprep.subr.bf16.mxu0 %v2848_v8 }
 0x79a   : > { %2575 = vmatpush3.bf16.msra.mxu0 %v2665_v47 }
 0x860   : > { %v1857_v42 = vpop.f32.mrb[8].mxu0 }
 0x861   : > { %2001 = vxpose.xlu1.b32.start.end [1/1] (short) (narrow) %v1857_v42, 8  ;;  %v2552_v24 = vpop.f32.mrb[9].mxu0 }
 0x862   : > { %v1860_v63 = vpop.f32.mrb[10].mxu0  ;;  %v1903_v0 = vpop.f32.mrb[12].mxu1  ;;  %v2486_v24 = vld [vmem:[%s3374_s4] ss:$0 sm:$0xff] }
 0x863   : > { %2033 = vxpose.xlu0.b32.start.end [1/1] (short) (narrow) %v1903_v0, 8  ;;  %v2553_v1 = vpop.f32.mrb[11].mxu0  ;;  %v2558_v2 = vpop.f32.mrb[13].mxu1 }
 0x864   : > { %v1906_v3 = vpop.f32.mrb[14].mxu1 }
 0x865   : > { %v2559_v4 = vpop.f32.mrb[15].mxu1  ;;  %v2684_v3 = vld [vmem:[%s3077_s29] sm:$0xff]  ;;  %s2861_s29 = smov [#allocation8]  }
 0x868   : > { %v1949_v5 = vpop.f32.mrb[12].mxu0 }
 0x869   : > { %2065 = vxpose.xlu0.b32.start.end [1/1] (short) (narrow) %v1949_v5, 8  ;;  %v2564_v6 = vpop.f32.mrb[13].mxu0 }
 0x86a   : > { %v1952_v7 = vpop.f32.mrb[14].mxu0  ;;  %v1995_v22 = vpop.f32.mrb[16].mxu1 }
 0x86b   : > { %v2565_v27 = vpop.f32.mrb[15].mxu0  ;;  %v2570_v9 = vpop.f32.mrb[17].mxu1 }
 0x86c   : > { %v1998_v26 = vpop.f32.mrb[18].mxu1 }
 0x86d   : > { %v2571_v11 = vpop.f32.mrb[19].mxu1  ;;  %2097 = vxpose.xlu0.b32.start.end [1/1] (short) (narrow) %v1995_v22, 8 }
 0x8e1   : > { %v2017_v15 = vpop.trf.xlu1 }
 0x8e3   : > { %v2049_v12 = vpop.trf.xlu0 }
 0x8e9   : > { %v2081_v13 = vpop.trf.xlu0 }
 0x8ea   : > { %v2129_v16 = vcombine.low %v2017_v15, %v2081_v13  ;;  %v2130_v17 = vcombine.high %v2017_v15, %v2081_v13 }
 0x8ec   : > { %v2137_v23 = vrot.slane %v2129_v16, %v3125_v40  ;;  %v2144_v25 = vrot.slane %v2130_v17, %v3125_v40 }
 0x8ed   : > { %v2113_v18 = vpop.trf.xlu0 }
 0x8ee   : > { %v2145_v20 = vcombine.low %v2049_v12, %v2113_v18  ;;  %v2146_v21 = vcombine.high %v2049_v12, %v2113_v18 }
 0x8f0   : > { %v2153_v29 = vrot.slane %v2145_v20, %v3125_v40  ;;  %v2160_v30 = vrot.slane %v2146_v21, %v3125_v40 }
 0x8f2   : > { %v2161_v31 = vcombine.low %v2137_v23, %v2153_v29  ;;  %v2162_v32 = vcombine.high %v2137_v23, %v2153_v29  ;;  %v2177_v33 = vcombine.low %v2144_v25, %v2160_v30  ;;  %v2178_v36 = vcombine.high %v2144_v25, %v2160_v30 }
 0x8f4   : > { %v2169_v38 = vrot.slane %v2161_v31, %v3130_v49  ;;  %v2176_v39 = vrot.slane %v2162_v32, %v3130_v49  ;;  %v2185_v41 = vrot.slane %v2177_v33, %v3130_v49  ;;  %v2192_v43 = vrot.slane %v2178_v36, %v3130_v49 }
 0x8f6   : > { %v2197_v28 = vcombine.low %v2169_v38, %v2176_v39  ;;  %v2484_v44 = vcombine.high %v2169_v38, %v2176_v39  ;;  %v2213_v45 = vcombine.low %v2185_v41, %v2192_v43  ;;  %v2485_v46 = vcombine.high %v2185_v41, %v2192_v43 }
 0x8f8   : > { %v2204_v48 = vrot.slane %v2197_v28, %v3125_v40  ;;  %v2212_v50 = vrot.slane %v2484_v44, %v3125_v40  ;;  %v2220_v51 = vrot.slane %v2213_v45, %v3125_v40  ;;  %v2228_v52 = vrot.slane %v2485_v46, %v3125_v40 }
 0x8fa   : > { %v2230_v53 = vcombine.high %v2204_v48, %v2212_v50  ;;  %v2246_v54 = vcombine.high %v2220_v51, %v2228_v52  ;;  %v2229_v55 = vcombine.low %v2204_v48, %v2212_v50  ;;  %v2245_v56 = vcombine.low %v2220_v51, %v2228_v52 }
 0x8fc   : > { %v2244_v8 = vrot.slane %v2230_v53, %v3130_v49  ;;  %v2260_v57 = vrot.slane %v2246_v54, %v3130_v49  ;;  %v2237_v58 = vrot.slane %v2229_v55, %v3130_v49  ;;  %v2253_v59 = vrot.slane %v2245_v56, %v3130_v49 }
 0x8fe   : > { %v2263_v19 = vcombine.low %v2244_v8, %v2260_v57  ;;  %v2262_v60 = vcombine.high %v2237_v58, %v2253_v59  ;;  %v2261_v61 = vcombine.low %v2237_v58, %v2253_v59  ;;  %v2264_v40 = vcombine.high %v2244_v8, %v2260_v57 }
 0x900   : > { %2270 = vrot.lane.b32.xlu0 %v2263_v19, %s2858_s30  ;;  %2266 = vrot.lane.b32.xlu1 %v2262_v60, %s2859_s9  ;;  %s2775_s30 = sshll.u32 %s2861_s29, 4  ;;  %s2776_s30 = int_to_ptr.vmem [resolvable:$false] %s2775_s30 }
 0x901   : > { %s2777_s9 = scalar_lea.vmem %s2776_s30, 256  ;;  %p2778_p7 = scmp.lt.s32.totalorder %s3327_s21, %s2776_s30 }
 0x902   : > { %p2779_p9 = scmp.lt.s32.totalorder %s2777_s9, %s2771_s14 }
 0x904   : > { %2274 = vrot.lane.b32.xlu1 %v2264_v40, %s2860_s20  ;;  %p2780_p12 = por %p2779_p9, %p2778_p7 }
 0x906   : > { %p2781_p2 = pnand %p2780_p12, %p2774_p3 }
 0x972   : > { %v2267_v62 = vpop.permute.xlu1 %2266  ;;  %v2271_v10 = vpop.permute.xlu0 %2270 }
 0x973   : > { %v2277_v14 = vsel %vm1165_vm3, %v2261_v61, %v2267_v62 }
 0x974   : > { %v2279_v34 = vsel %vm2278_vm4, %v2277_v14, %v2271_v10 }
 0x976   : > { %v2275_v49 = vpop.permute.xlu1 %2274 }
 0x977   : > { %v2281_v35 = vsel %vm2280_vm5, %v2279_v34, %v2275_v49 }
 0x978   : > { %v2282_v42 = vpack.c.bf16 %v2281_v35, %v2281_v35 }
 0x97a   : > { %2577 = vmatmul.mubr.msk.bf16.vlgmr.msra.gmra.mrb[16].mxu0 %vm327_vm0, %v2282_v42 }
 0xa4d   : > { %v2343_v63 = vpop.f32.mrb[16].mxu0 }
 0xa4e   : > { %v2344_v0 = vadd.f32 %v2486_v24, %v2343_v63  ;;  %v2578_v1 = vpop.f32.mrb[17].mxu0 }
 0xa4f   : > { %v2346_v2 = vpop.f32.mrb[18].mxu0 }
 0xa50   : > { %v2349_v4 = vadd.f32 %v2684_v3, %v2344_v0  ;;  %v2579_v5 = vpop.f32.mrb[19].mxu0 }
 0xa52   : > { %2350 = vst.msk [vmem:[%s322_s18] sm:$0xff] %vm327_vm0, %v2349_v4 }
 0xa53   : > { %2784 = shalt.err (!%p2781_p2)
}
 0xa54   : > { %s2785_s12 = scalar_lea.hbm %s3325_s23, 128  ;;  %s2789_s22 = scalar_lea.hbm %s3377_s7, 256 }
 0xa55   : > { %p2786_p13 = scmp.ne.s32.totalorder %s3325_s23, %s2785_s12  ;;  %p2790_p4 = scmp.lt.u32.totalorder %s3325_s23, %s3377_s7 }
 0xa56   : > { %p2791_p5 = scmp.lt.u32.totalorder %s2789_s22, %s2785_s12  ;;  %p2793_p11 = scmp.lt.u32.totalorder %s2785_s12, %s3325_s23 }
 0xa57   : > { %p2787_p6 = pnand %p2786_p13, %p3391_p0 }
 0xa58   : > { %p2792_p8 = por %p2791_p5, %p2790_p4 }
 0xa59   : > { %p2788_p10 = pneg %p2787_p6 }
 0xa5a   : > { %p2794_p1 = por %p2793_p11, %p2792_p8 }
 0xa5c   : > { %p2795_p3 = pnand %p2794_p1, %p2788_p10 }
 0xa5e   : > { %2798 = shalt.err (!%p2795_p3)
}
 0xa5f   : > { %2590 = dma.vmem_to_hbm [thread:$0]  (%p3391_p0), %s3327_s21, 128, %s3325_s23, %s2352_s28  }
 0xa60 PF: > { %s2377_s15 = sand.u32 1, %s2829_s24   ;;  %p3392_p7 = scmp.ne.s32.totalorder %s3382_s8, 0 }
 0xa61   : > { %p3393_p9 = scmp.ge.s32.totalorder %s2841_s27, 2  ;;  %s2378_s19 = scalar_lea.sflag [#allocation4], %s2377_s15 }
 0xa63   : > { %p2604_p12 = pnand %p3393_p9, %p3392_p7 }
 0xa65   : > { %2824 = dma.done.wait (!%p2604_p12), %s2378_s19, 128  }
 0xa66   : > { %2826 = vsyncadd (!%p2604_p12), %s2378_s19, 4294967168  ;;  %p21_p2 = scmp.ge.s32.totalorder %s3012_s13, 4   ;;  %s3394_s24 = smov %s2833_s25 }
 0xa67   : > { %s3395_s25 = smov %s2837_s26  ;;  %s3396_s26 = smov %s3028_s17 }
 0xa68   : > { %s3397_s27 = smov %s3012_s13  ;;  %23 = sbr.rel (!%p21_p2) target bundleno = 6 (0x6), region = 101 }
 0xa6f   :  { %2383 = vsyncpa [#allocation3], 1 }
 0xa70   :  { %2385 = vsyncpa [#allocation3 + $0x1], 1 }
 0xa71   :  { %2386 = vsyncpa [#allocation6], 1 }
 0xa72   :  { %2387 = vsyncpa [#allocation4], 1 }
 0xa73   :  { %2389 = vsyncpa [#allocation4 + $0x1], 1 }

</bundles_post_ra>
